<compile_context>
chip_gen: v7x
topology: tpu7x:2x2x1
jax: 0.10.0
libtpu: 0.0.40
codegen_flags: <defaults>
</compile_context>

<pallas_src>
import functools

import jax
import jax.numpy as jnp
from jax.experimental import pallas as pl
from jax.experimental.pallas import tpu as pltpu

_BN_EPS = 1e-5


def _round_up(x, m):
    return (x + m - 1) // m * m


# --------------------------- fused conv+BN kernel ----------------------------
# One grid step = one batch element.  The phase-decomposed padded image lives
# in VMEM; the conv is kh*kw shifted MXU dots accumulated in f32 registers.
# Epilogue: + folded-BN bias, + residual (precomputed identity tensor, or a
# fused 1x1-projection dot), ReLU, lane-dense store.

def _conv_bn_kernel(*refs, kh, kw, stride, Ho, Wo, Hph, relu, res_mode):
    if res_mode == 1:          # identity residual tensor
        x_ref, w_ref, b_ref, r_ref, o_ref = refs
    elif res_mode == 2:        # fused 1x1 projection shortcut
        x_ref, w_ref, b_ref, xs_ref, wsc_ref, bsc_ref, o_ref = refs
    else:                      # no residual
        x_ref, w_ref, b_ref, o_ref = refs

    s = stride
    M = Ho * Wo
    acc = None
    for i in range(kh):
        for j in range(kw):
            # Tap (i, j): contiguous static slice of the phase-decomposed input.
            base = ((i % s) * s + (j % s)) * Hph + i // s
            oj = j // s
            tap = x_ref[0, base:base + Ho, oj:oj + Wo, :]      # (Ho, Wo, Cin)
            tap = tap.reshape(M, tap.shape[-1])                # (M, Cin)
            part = jnp.dot(tap, w_ref[i * kw + j],
                           preferred_element_type=jnp.float32)
            acc = part if acc is None else acc + part

    y = acc + b_ref[...]                                       # (M, Coutp) f32
    if res_mode == 1:
        y = y + r_ref[0].astype(jnp.float32)
    elif res_mode == 2:
        y = y + jnp.dot(xs_ref[0], wsc_ref[...],
                        preferred_element_type=jnp.float32) + bsc_ref[...]
    if relu:
        y = jnp.maximum(y, 0.0)
    o_ref[0] = y.astype(o_ref.dtype)


# ------------------------------- wrappers ------------------------------------

def _phase_decompose(x, kh, kw, stride, pad):
    """Pad + space-to-depth so every conv tap is a contiguous static slice.

    Returns xph of shape (N, stride*stride*Hph, Wph, C) where tap (i, j) of a
    (kh, kw) stride-s conv reads
        xph[n, ((i%s)*s + j%s)*Hph + i//s + h, j//s + w, :]
    for output position (h, w).  For stride 1 this is just the padded image.
    """
    N, H, W, C = x.shape
    s = stride
    Ho = (H + 2 * pad - kh) // s + 1
    Wo = (W + 2 * pad - kw) // s + 1
    Hph = Ho + (kh - 1) // s
    Wph = Wo + (kw - 1) // s
    hp_after = s * Hph - H - pad
    wp_after = s * Wph - W - pad
    assert hp_after >= 0 and wp_after >= 0
    xpad = jnp.pad(x, ((0, 0), (pad, hp_after), (pad, wp_after), (0, 0)))
    if s > 1:
        xpad = xpad.reshape(N, Hph, s, Wph, s, C)
        xpad = xpad.transpose(0, 2, 4, 1, 3, 5)      # (N, s, s, Hph, Wph, C)
    xph = xpad.reshape(N, s * s * Hph, Wph, C)
    return xph, Ho, Wo, Hph, Wph


def conv_bn_act(x, p, *, stride, pad, relu, out_dtype,
                residual=None, shortcut=None):
    """Fused Conv2d(bias=False) + frozen BatchNorm (+ residual) (+ ReLU).

    x:        NHWC activations (channels may already be zero-padded past Cin).
    residual: NHWC tensor added before the ReLU (identity shortcut).
    shortcut: (block_input, shortcut_params, shortcut_stride) — fuses the
              1x1-conv+BN projection into this kernel's epilogue.
    Returns NHWC output with channels padded to a multiple of 128; padded
    channels are exactly zero.
    """
    N, H, W, Cx = x.shape
    w = p['w']                                    # (Cout, Cin, kh, kw) torch layout
    Cout, Cin, kh, kw = w.shape
    assert Cx >= Cin
    Coutp = _round_up(Cout, 128)

    scale = p['gamma'] * jax.lax.rsqrt(p['var'] + _BN_EPS)
    bias = p['beta'] - p['mean'] * scale
    # (kh*kw, Cin, Cout) with BN scale folded; zero-pad Cin rows up to the
    # (possibly channel-padded) input width and Cout cols up to a lane multiple.
    wmat = w.transpose(2, 3, 1, 0).reshape(kh * kw, Cin, Cout) * scale[None, None, :]
    wmat = jnp.pad(wmat, ((0, 0), (0, Cx - Cin), (0, Coutp - Cout))).astype(jnp.bfloat16)
    bvec = jnp.pad(bias, (0, Coutp - Cout)).reshape(1, Coutp).astype(jnp.float32)

    xph, Ho, Wo, Hph, Wph = _phase_decompose(x.astype(jnp.bfloat16),
                                             kh, kw, stride, pad)
    M = Ho * Wo
    s = stride

    inputs = [xph, wmat, bvec]
    in_specs = [
        pl.BlockSpec((1, s * s * Hph, Wph, Cx), lambda n: (n, 0, 0, 0)),
        pl.BlockSpec((kh * kw, Cx, Coutp), lambda n: (0, 0, 0)),  # VMEM-resident
        pl.BlockSpec((1, Coutp), lambda n: (0, 0)),
    ]

    res_mode = 0
    extra_flops = 0
    if residual is not None:
        res_mode = 1
        Cr = residual.shape[-1]
        assert residual.shape[:3] == (N, Ho, Wo) and Cr <= Coutp
        r = jnp.pad(residual.reshape(N, M, Cr), ((0, 0), (0, 0), (0, Coutp - Cr)))
        inputs.append(r.astype(jnp.bfloat16))
        in_specs.append(pl.BlockSpec((1, M, Coutp), lambda n: (n, 0, 0)))
    elif shortcut is not None:
        res_mode = 2
        x_in, sp, s_stride = shortcut
        xs = x_in[:, ::s_stride, ::s_stride, :]               # 1x1 stride-s patches
        assert xs.shape[1] == Ho and xs.shape[2] == Wo
        Cs = xs.shape[-1]
        Cout_sc = sp['w'].shape[0]
        xs = xs.reshape(N, M, Cs).astype(jnp.bfloat16)
        sc_scale = sp['gamma'] * jax.lax.rsqrt(sp['var'] + _BN_EPS)
        sc_bias = sp['beta'] - sp['mean'] * sc_scale
        wsc = sp['w'].reshape(Cout_sc, Cs).T * sc_scale[None, :]      # (Cs, Cout)
        wsc = jnp.pad(wsc, ((0, 0), (0, Coutp - Cout_sc))).astype(jnp.bfloat16)
        bsc = jnp.pad(sc_bias, (0, Coutp - Cout_sc)).reshape(1, Coutp).astype(jnp.float32)
        inputs += [xs, wsc, bsc]
        in_specs += [
            pl.BlockSpec((1, M, Cs), lambda n: (n, 0, 0)),
            pl.BlockSpec((Cs, Coutp), lambda n: (0, 0)),
            pl.BlockSpec((1, Coutp), lambda n: (0, 0)),
        ]
        extra_flops = 2 * N * M * Cs * Coutp

    kernel = functools.partial(_conv_bn_kernel, kh=kh, kw=kw, stride=s,
                               Ho=Ho, Wo=Wo, Hph=Hph, relu=relu,
                               res_mode=res_mode)

    flops = 2 * N * M * Cx * Coutp * kh * kw + extra_flops
    bytes_accessed = sum(int(a.size) * a.dtype.itemsize for a in inputs)
    bytes_accessed += N * M * Coutp * jnp.dtype(out_dtype).itemsize

    out = pl.pallas_call(
        kernel,
        out_shape=jax.ShapeDtypeStruct((N, M, Coutp), out_dtype),
        grid=(N,),
        in_specs=in_specs,
        out_specs=pl.BlockSpec((1, M, Coutp), lambda n: (n, 0, 0)),
        compiler_params=pltpu.CompilerParams(
            dimension_semantics=("parallel",)),
        cost_estimate=pl.CostEstimate(flops=int(flops), transcendentals=0,
                                      bytes_accessed=int(bytes_accessed)),
    )(*inputs)
    return out.reshape(N, Ho, Wo, Coutp)


# ------------------------------ BasicBlock ------------------------------------

def basic_block_forward_nhwc(params, x, stride):
    """relu(bn2(conv2(relu(bn1(conv1(x))))) + shortcut(x)) in NHWC.

    Output channels are padded to a multiple of 128 (extra channels are zero).
    Chain blocks through this entry point to avoid per-block relayouts.
    """
    y = conv_bn_act(x, params['conv1'], stride=stride, pad=1, relu=True,
                    out_dtype=jnp.bfloat16)
    if 'shortcut' in params:
        # 1x1 projection shortcut fused into conv2's epilogue (no 3rd kernel).
        out = conv_bn_act(y, params['conv2'], stride=1, pad=1, relu=True,
                          out_dtype=jnp.float32,
                          shortcut=(x, params['shortcut'], stride))
    else:
        out = conv_bn_act(y, params['conv2'], stride=1, pad=1, relu=True,
                          out_dtype=jnp.float32, residual=x)
    return out


def basic_block_forward(params, x_nchw, stride):
    # NCHW <-> NHWC only at the PyTorch-facing boundary.
    x = jnp.transpose(x_nchw, (0, 2, 3, 1))
    out = basic_block_forward_nhwc(params, x, stride)
    planes = params['conv2']['w'].shape[0]
    return jnp.transpose(out[..., :planes], (0, 3, 1, 2))


# --------------------------- parameter construction ---------------------------

def _init_conv_bn(key, cin, cout, k):
    kw_, kg, kb, km, kv = jax.random.split(key, 5)
    return {
        'w': 0.05 * jax.random.normal(kw_, (cout, cin, k, k), jnp.float32),
        'gamma': 1.0 + 0.1 * jax.random.normal(kg, (cout,), jnp.float32),
        'beta': 0.1 * jax.random.normal(kb, (cout,), jnp.float32),
        'mean': 0.1 * jax.random.normal(km, (cout,), jnp.float32),
        'var': 0.5 + jax.random.uniform(kv, (cout,), jnp.float32),
    }


def init_basic_block(key, in_planes, planes, stride):
    k1, k2, k3 = jax.random.split(key, 3)
    p = {'conv1': _init_conv_bn(k1, in_planes, planes, 3),
         'conv2': _init_conv_bn(k2, planes, planes, 3)}
    if stride != 1 or in_planes != planes:
        p['shortcut'] = _init_conv_bn(k3, in_planes, planes, 1)
    return p


# ------------------------------ pure-JAX reference ----------------------------

def _conv_bn_ref(x, p, stride, pad, relu):
    y = jax.lax.conv_general_dilated(
        x, p['w'], window_strides=(stride, stride),
        padding=((pad, pad), (pad, pad)),
        dimension_numbers=('NCHW', 'OIHW', 'NCHW'))
    scale = p['gamma'] / jnp.sqrt(p['var'] + _BN_EPS)
    bias = p['beta'] - p['mean'] * scale
    y = y * scale[None, :, None, None] + bias[None, :, None, None]
    return jnp.maximum(y, 0.0) if relu else y


def basic_block_ref(params, x, stride):
    out = _conv_bn_ref(x, params['conv1'], stride, 1, True)
    out = _conv_bn_ref(out, params['conv2'], 1, 1, False)
    if 'shortcut' in params:
        sc = _conv_bn_ref(x, params['shortcut'], stride, 0, False)
    else:
        sc = x
    return jnp.maximum(out + sc, 0.0)


# ----------------------------------- main --------------------------------------

if __name__ == "__main__":
    key = jax.random.PRNGKey(0)
    kp1, kp2, kx1, kx2 = jax.random.split(key, 4)

    fwd = jax.jit(basic_block_forward, static_argnums=2)

    # Case 1: stride=2 with channel expansion -> fused 1x1 projection shortcut.
    in_planes, planes, stride = 32, 64, 2
    params1 = init_basic_block(kp1, in_planes, planes, stride)
    x1 = jax.random.normal(kx1, (2, in_planes, 16, 16), jnp.float32)
    out1 = jax.block_until_ready(fwd(params1, x1, stride))
    assert out1.shape == (2, planes, 8, 8), out1.shape
    assert bool(jnp.all(jnp.isfinite(out1)))
    ref1 = basic_block_ref(params1, x1, stride)
    err1 = float(jnp.max(jnp.abs(out1 - ref1)))
    assert err1 < 1e-1, f"case1 max err {err1}"

    # Case 2: stride=1 identity shortcut.
    params2 = init_basic_block(kp2, planes, planes, 1)
    x2 = jax.random.normal(kx2, (2, planes, 16, 16), jnp.float32)
    out2 = jax.block_until_ready(fwd(params2, x2, 1))
    assert out2.shape == (2, planes, 16, 16), out2.shape
    assert bool(jnp.all(jnp.isfinite(out2)))
    ref2 = basic_block_ref(params2, x2, 1)
    err2 = float(jnp.max(jnp.abs(out2 - ref2)))
    assert err2 < 1e-1, f"case2 max err {err2}"

    print("KERNEL_OK")
</pallas_src>

<mosaic_0001>
module attributes {stable_mosaic.version = 11 : i64} {
  func.func @_conv_bn_kernel(%arg0: i32, %arg1: memref<1x36x9x32xbf16, #tpu.memory_space<vmem>>, %arg2: memref<9x32x128xbf16, #tpu.memory_space<vmem>>, %arg3: memref<1x128xf32, #tpu.memory_space<vmem>>, %arg4: memref<1x64x128xbf16, #tpu.memory_space<vmem>>) attributes {dimension_semantics = [#tpu.dimension_semantics<parallel>], iteration_bounds = array<i64: 2>, scalar_prefetch = 0 : i64, scratch_operands = 0 : i64, tpu.core_type = #tpu.core_type<tc>, window_params = [{transform_indices = @transform_0, window_bounds = array<i64: 1, 36, 9, 32>}, {pipeline_mode = #tpu.pipeline_mode<synchronous>, transform_indices = @transform_1, window_bounds = array<i64: 9, 32, 128>}, {pipeline_mode = #tpu.pipeline_mode<synchronous>, transform_indices = @transform_2, window_bounds = array<i64: 1, 128>}, {transform_indices = @transform_3, window_bounds = array<i64: 1, 64, 128>}]} {
    %c0 = arith.constant 0 : index
    %c0_0 = arith.constant 0 : index
    %c0_1 = arith.constant 0 : index
    %c0_2 = arith.constant 0 : index
    %0 = vector.load %arg1[%c0, %c0_0, %c0_1, %c0_2] : memref<1x36x9x32xbf16, #tpu.memory_space<vmem>>, vector<1x8x8x32xbf16>
    %1 = vector.shape_cast %0 : vector<1x8x8x32xbf16> to vector<8x8x32xbf16>
    %2 = vector.shape_cast %1 : vector<8x8x32xbf16> to vector<64x32xbf16>
    %c0_3 = arith.constant 0 : index
    %c0_4 = arith.constant 0 : index
    %c0_5 = arith.constant 0 : index
    %3 = vector.load %arg2[%c0_3, %c0_4, %c0_5] : memref<9x32x128xbf16, #tpu.memory_space<vmem>>, vector<1x32x128xbf16>
    %4 = vector.shape_cast %3 : vector<1x32x128xbf16> to vector<32x128xbf16>
    %cst = arith.constant dense<0.000000e+00> : vector<64x128xf32>
    %5 = tpu.matmul %2, %4, %cst {dimension_numbers = #tpu.dot_dimension_numbers<[1], [0], [0], [1], [0, 0, 1, 1], [], []>} : vector<64x32xbf16>, vector<32x128xbf16>, vector<64x128xf32> -> vector<64x128xf32>
    %c0_6 = arith.constant 0 : index
    %c9 = arith.constant 9 : index
    %c0_7 = arith.constant 0 : index
    %c0_8 = arith.constant 0 : index
    %6 = vector.load %arg1[%c0_6, %c9, %c0_7, %c0_8] : memref<1x36x9x32xbf16, #tpu.memory_space<vmem>>, vector<1x8x8x32xbf16>
    %7 = vector.shape_cast %6 : vector<1x8x8x32xbf16> to vector<8x8x32xbf16>
    %8 = vector.shape_cast %7 : vector<8x8x32xbf16> to vector<64x32xbf16>
    %c1 = arith.constant 1 : index
    %c0_9 = arith.constant 0 : index
    %c0_10 = arith.constant 0 : index
    %9 = vector.load %arg2[%c1, %c0_9, %c0_10] : memref<9x32x128xbf16, #tpu.memory_space<vmem>>, vector<1x32x128xbf16>
    %10 = vector.shape_cast %9 : vector<1x32x128xbf16> to vector<32x128xbf16>
    %cst_11 = arith.constant dense<0.000000e+00> : vector<64x128xf32>
    %11 = tpu.matmul %8, %10, %cst_11 {dimension_numbers = #tpu.dot_dimension_numbers<[1], [0], [0], [1], [0, 0, 1, 1], [], []>} : vector<64x32xbf16>, vector<32x128xbf16>, vector<64x128xf32> -> vector<64x128xf32>
    %12 = arith.addf %5, %11 : vector<64x128xf32>
    %c0_12 = arith.constant 0 : index
    %c0_13 = arith.constant 0 : index
    %c1_14 = arith.constant 1 : index
    %c0_15 = arith.constant 0 : index
    %13 = vector.load %arg1[%c0_12, %c0_13, %c1_14, %c0_15] : memref<1x36x9x32xbf16, #tpu.memory_space<vmem>>, vector<1x8x8x32xbf16>
    %14 = vector.shape_cast %13 : vector<1x8x8x32xbf16> to vector<8x8x32xbf16>
    %15 = vector.shape_cast %14 : vector<8x8x32xbf16> to vector<64x32xbf16>
    %c2 = arith.constant 2 : index
    %c0_16 = arith.constant 0 : index
    %c0_17 = arith.constant 0 : index
    %16 = vector.load %arg2[%c2, %c0_16, %c0_17] : memref<9x32x128xbf16, #tpu.memory_space<vmem>>, vector<1x32x128xbf16>
    %17 = vector.shape_cast %16 : vector<1x32x128xbf16> to vector<32x128xbf16>
    %cst_18 = arith.constant dense<0.000000e+00> : vector<64x128xf32>
    %18 = tpu.matmul %15, %17, %cst_18 {dimension_numbers = #tpu.dot_dimension_numbers<[1], [0], [0], [1], [0, 0, 1, 1], [], []>} : vector<64x32xbf16>, vector<32x128xbf16>, vector<64x128xf32> -> vector<64x128xf32>
    %19 = arith.addf %12, %18 : vector<64x128xf32>
    %c0_19 = arith.constant 0 : index
    %c18 = arith.constant 18 : index
    %c0_20 = arith.constant 0 : index
    %c0_21 = arith.constant 0 : index
    %20 = vector.load %arg1[%c0_19, %c18, %c0_20, %c0_21] : memref<1x36x9x32xbf16, #tpu.memory_space<vmem>>, vector<1x8x8x32xbf16>
    %21 = vector.shape_cast %20 : vector<1x8x8x32xbf16> to vector<8x8x32xbf16>
    %22 = vector.shape_cast %21 : vector<8x8x32xbf16> to vector<64x32xbf16>
    %c3 = arith.constant 3 : index
    %c0_22 = arith.constant 0 : index
    %c0_23 = arith.constant 0 : index
    %23 = vector.load %arg2[%c3, %c0_22, %c0_23] : memref<9x32x128xbf16, #tpu.memory_space<vmem>>, vector<1x32x128xbf16>
    %24 = vector.shape_cast %23 : vector<1x32x128xbf16> to vector<32x128xbf16>
    %cst_24 = arith.constant dense<0.000000e+00> : vector<64x128xf32>
    %25 = tpu.matmul %22, %24, %cst_24 {dimension_numbers = #tpu.dot_dimension_numbers<[1], [0], [0], [1], [0, 0, 1, 1], [], []>} : vector<64x32xbf16>, vector<32x128xbf16>, vector<64x128xf32> -> vector<64x128xf32>
    %26 = arith.addf %19, %25 : vector<64x128xf32>
    %c0_25 = arith.constant 0 : index
    %c27 = arith.constant 27 : index
    %c0_26 = arith.constant 0 : index
    %c0_27 = arith.constant 0 : index
    %27 = vector.load %arg1[%c0_25, %c27, %c0_26, %c0_27] : memref<1x36x9x32xbf16, #tpu.memory_space<vmem>>, vector<1x8x8x32xbf16>
    %28 = vector.shape_cast %27 : vector<1x8x8x32xbf16> to vector<8x8x32xbf16>
    %29 = vector.shape_cast %28 : vector<8x8x32xbf16> to vector<64x32xbf16>
    %c4 = arith.constant 4 : index
    %c0_28 = arith.constant 0 : index
    %c0_29 = arith.constant 0 : index
    %30 = vector.load %arg2[%c4, %c0_28, %c0_29] : memref<9x32x128xbf16, #tpu.memory_space<vmem>>, vector<1x32x128xbf16>
    %31 = vector.shape_cast %30 : vector<1x32x128xbf16> to vector<32x128xbf16>
    %cst_30 = arith.constant dense<0.000000e+00> : vector<64x128xf32>
    %32 = tpu.matmul %29, %31, %cst_30 {dimension_numbers = #tpu.dot_dimension_numbers<[1], [0], [0], [1], [0, 0, 1, 1], [], []>} : vector<64x32xbf16>, vector<32x128xbf16>, vector<64x128xf32> -> vector<64x128xf32>
    %33 = arith.addf %26, %32 : vector<64x128xf32>
    %c0_31 = arith.constant 0 : index
    %c18_32 = arith.constant 18 : index
    %c1_33 = arith.constant 1 : index
    %c0_34 = arith.constant 0 : index
    %34 = vector.load %arg1[%c0_31, %c18_32, %c1_33, %c0_34] : memref<1x36x9x32xbf16, #tpu.memory_space<vmem>>, vector<1x8x8x32xbf16>
    %35 = vector.shape_cast %34 : vector<1x8x8x32xbf16> to vector<8x8x32xbf16>
    %36 = vector.shape_cast %35 : vector<8x8x32xbf16> to vector<64x32xbf16>
    %c5 = arith.constant 5 : index
    %c0_35 = arith.constant 0 : index
    %c0_36 = arith.constant 0 : index
    %37 = vector.load %arg2[%c5, %c0_35, %c0_36] : memref<9x32x128xbf16, #tpu.memory_space<vmem>>, vector<1x32x128xbf16>
    %38 = vector.shape_cast %37 : vector<1x32x128xbf16> to vector<32x128xbf16>
    %cst_37 = arith.constant dense<0.000000e+00> : vector<64x128xf32>
    %39 = tpu.matmul %36, %38, %cst_37 {dimension_numbers = #tpu.dot_dimension_numbers<[1], [0], [0], [1], [0, 0, 1, 1], [], []>} : vector<64x32xbf16>, vector<32x128xbf16>, vector<64x128xf32> -> vector<64x128xf32>
    %40 = arith.addf %33, %39 : vector<64x128xf32>
    %c0_38 = arith.constant 0 : index
    %c1_39 = arith.constant 1 : index
    %c0_40 = arith.constant 0 : index
    %c0_41 = arith.constant 0 : index
    %41 = vector.load %arg1[%c0_38, %c1_39, %c0_40, %c0_41] : memref<1x36x9x32xbf16, #tpu.memory_space<vmem>>, vector<1x8x8x32xbf16>
    %42 = vector.shape_cast %41 : vector<1x8x8x32xbf16> to vector<8x8x32xbf16>
    %43 = vector.shape_cast %42 : vector<8x8x32xbf16> to vector<64x32xbf16>
    %c6 = arith.constant 6 : index
    %c0_42 = arith.constant 0 : index
    %c0_43 = arith.constant 0 : index
    %44 = vector.load %arg2[%c6, %c0_42, %c0_43] : memref<9x32x128xbf16, #tpu.memory_space<vmem>>, vector<1x32x128xbf16>
    %45 = vector.shape_cast %44 : vector<1x32x128xbf16> to vector<32x128xbf16>
    %cst_44 = arith.constant dense<0.000000e+00> : vector<64x128xf32>
    %46 = tpu.matmul %43, %45, %cst_44 {dimension_numbers = #tpu.dot_dimension_numbers<[1], [0], [0], [1], [0, 0, 1, 1], [], []>} : vector<64x32xbf16>, vector<32x128xbf16>, vector<64x128xf32> -> vector<64x128xf32>
    %47 = arith.addf %40, %46 : vector<64x128xf32>
    %c0_45 = arith.constant 0 : index
    %c10 = arith.constant 10 : index
    %c0_46 = arith.constant 0 : index
    %c0_47 = arith.constant 0 : index
    %48 = vector.load %arg1[%c0_45, %c10, %c0_46, %c0_47] : memref<1x36x9x32xbf16, #tpu.memory_space<vmem>>, vector<1x8x8x32xbf16>
    %49 = vector.shape_cast %48 : vector<1x8x8x32xbf16> to vector<8x8x32xbf16>
    %50 = vector.shape_cast %49 : vector<8x8x32xbf16> to vector<64x32xbf16>
    %c7 = arith.constant 7 : index
    %c0_48 = arith.constant 0 : index
    %c0_49 = arith.constant 0 : index
    %51 = vector.load %arg2[%c7, %c0_48, %c0_49] : memref<9x32x128xbf16, #tpu.memory_space<vmem>>, vector<1x32x128xbf16>
    %52 = vector.shape_cast %51 : vector<1x32x128xbf16> to vector<32x128xbf16>
    %cst_50 = arith.constant dense<0.000000e+00> : vector<64x128xf32>
    %53 = tpu.matmul %50, %52, %cst_50 {dimension_numbers = #tpu.dot_dimension_numbers<[1], [0], [0], [1], [0, 0, 1, 1], [], []>} : vector<64x32xbf16>, vector<32x128xbf16>, vector<64x128xf32> -> vector<64x128xf32>
    %54 = arith.addf %47, %53 : vector<64x128xf32>
    %c0_51 = arith.constant 0 : index
    %c1_52 = arith.constant 1 : index
    %c1_53 = arith.constant 1 : index
    %c0_54 = arith.constant 0 : index
    %55 = vector.load %arg1[%c0_51, %c1_52, %c1_53, %c0_54] : memref<1x36x9x32xbf16, #tpu.memory_space<vmem>>, vector<1x8x8x32xbf16>
    %56 = vector.shape_cast %55 : vector<1x8x8x32xbf16> to vector<8x8x32xbf16>
    %57 = vector.shape_cast %56 : vector<8x8x32xbf16> to vector<64x32xbf16>
    %c8 = arith.constant 8 : index
    %c0_55 = arith.constant 0 : index
    %c0_56 = arith.constant 0 : index
    %58 = vector.load %arg2[%c8, %c0_55, %c0_56] : memref<9x32x128xbf16, #tpu.memory_space<vmem>>, vector<1x32x128xbf16>
    %59 = vector.shape_cast %58 : vector<1x32x128xbf16> to vector<32x128xbf16>
    %cst_57 = arith.constant dense<0.000000e+00> : vector<64x128xf32>
    %60 = tpu.matmul %57, %59, %cst_57 {dimension_numbers = #tpu.dot_dimension_numbers<[1], [0], [0], [1], [0, 0, 1, 1], [], []>} : vector<64x32xbf16>, vector<32x128xbf16>, vector<64x128xf32> -> vector<64x128xf32>
    %61 = arith.addf %54, %60 : vector<64x128xf32>
    %c0_58 = arith.constant 0 : index
    %c0_59 = arith.constant 0 : index
    %62 = vector.load %arg3[%c0_58, %c0_59] : memref<1x128xf32, #tpu.memory_space<vmem>>, vector<1x128xf32>
    %63 = vector.broadcast %62 : vector<1x128xf32> to vector<64x128xf32>
    %64 = arith.addf %61, %63 : vector<64x128xf32>
    %cst_60 = arith.constant 0.000000e+00 : f32
    %65 = vector.broadcast %cst_60 : f32 to vector<64x128xf32>
    %66 = arith.maximumf %64, %65 : vector<64x128xf32>
    %67 = arith.truncf %66 : vector<64x128xf32> to vector<64x128xbf16>
    %c0_61 = arith.constant 0 : index
    %c0_62 = arith.constant 0 : index
    %c0_63 = arith.constant 0 : index
    %68 = vector.load %arg4[%c0_61, %c0_62, %c0_63] : memref<1x64x128xbf16, #tpu.memory_space<vmem>>, vector<1x64x128xbf16>
    %69 = vector.shape_cast %68 : vector<1x64x128xbf16> to vector<64x128xbf16>
    %70 = vector.shape_cast %67 : vector<64x128xbf16> to vector<1x64x128xbf16>
    tpu.vector_store %arg4[%c0_61, %c0_62, %c0_63], %70 {strides = array<i32>} : memref<1x64x128xbf16, #tpu.memory_space<vmem>>, vector<1x64x128xbf16>,
    return
  }
  func.func @transform_0(%arg0: i32) -> (i32, i32, i32, i32) {
    %c0_i32 = arith.constant 0 : i32
    %c0_i32_0 = arith.constant 0 : i32
    %c0_i32_1 = arith.constant 0 : i32
    %c0_i32_2 = arith.constant 0 : i32
    return %arg0, %c0_i32, %c0_i32_0, %c0_i32_1 : i32, i32, i32, i32
  }
  func.func @transform_1(%arg0: i32) -> (i32, i32, i32) {
    %c0_i32 = arith.constant 0 : i32
    %c0_i32_0 = arith.constant 0 : i32
    %c0_i32_1 = arith.constant 0 : i32
    %c0_i32_2 = arith.constant 0 : i32
    return %c0_i32, %c0_i32_0, %c0_i32_1 : i32, i32, i32
  }
  func.func @transform_2(%arg0: i32) -> (i32, i32) {
    %c0_i32 = arith.constant 0 : i32
    %c0_i32_0 = arith.constant 0 : i32
    %c0_i32_1 = arith.constant 0 : i32
    return %c0_i32, %c0_i32_0 : i32, i32
  }
  func.func @transform_3(%arg0: i32) -> (i32, i32, i32) {
    %c0_i32 = arith.constant 0 : i32
    %c0_i32_0 = arith.constant 0 : i32
    %c0_i32_1 = arith.constant 0 : i32
    return %arg0, %c0_i32, %c0_i32_0 : i32, i32, i32
  }
}

module attributes {stable_mosaic.version = 11 : i64} {
  func.func @_conv_bn_kernel(%arg0: i32, %arg1: memref<1x10x10x128xbf16, #tpu.memory_space<vmem>>, %arg2: memref<9x128x128xbf16, #tpu.memory_space<vmem>>, %arg3: memref<1x128xf32, #tpu.memory_space<vmem>>, %arg4: memref<1x64x32xbf16, #tpu.memory_space<vmem>>, %arg5: memref<32x128xbf16, #tpu.memory_space<vmem>>, %arg6: memref<1x128xf32, #tpu.memory_space<vmem>>, %arg7: memref<1x64x128xf32, #tpu.memory_space<vmem>>) attributes {dimension_semantics = [#tpu.dimension_semantics<parallel>], iteration_bounds = array<i64: 2>, scalar_prefetch = 0 : i64, scratch_operands = 0 : i64, tpu.core_type = #tpu.core_type<tc>, window_params = [{transform_indices = @transform_0, window_bounds = array<i64: 1, 10, 10, 128>}, {pipeline_mode = #tpu.pipeline_mode<synchronous>, transform_indices = @transform_1, window_bounds = array<i64: 9, 128, 128>}, {pipeline_mode = #tpu.pipeline_mode<synchronous>, transform_indices = @transform_2, window_bounds = array<i64: 1, 128>}, {transform_indices = @transform_3, window_bounds = array<i64: 1, 64, 32>}, {pipeline_mode = #tpu.pipeline_mode<synchronous>, transform_indices = @transform_4, window_bounds = array<i64: 32, 128>}, {pipeline_mode = #tpu.pipeline_mode<synchronous>, transform_indices = @transform_5, window_bounds = array<i64: 1, 128>}, {transform_indices = @transform_6, window_bounds = array<i64: 1, 64, 128>}]} {
    %c0 = arith.constant 0 : index
    %c0_0 = arith.constant 0 : index
    %c0_1 = arith.constant 0 : index
    %c0_2 = arith.constant 0 : index
    %0 = vector.load %arg1[%c0, %c0_0, %c0_1, %c0_2] : memref<1x10x10x128xbf16, #tpu.memory_space<vmem>>, vector<1x8x8x128xbf16>
    %1 = vector.shape_cast %0 : vector<1x8x8x128xbf16> to vector<8x8x128xbf16>
    %2 = vector.shape_cast %1 : vector<8x8x128xbf16> to vector<64x128xbf16>
    %c0_3 = arith.constant 0 : index
    %c0_4 = arith.constant 0 : index
    %c0_5 = arith.constant 0 : index
    %3 = vector.load %arg2[%c0_3, %c0_4, %c0_5] : memref<9x128x128xbf16, #tpu.memory_space<vmem>>, vector<1x128x128xbf16>
    %4 = vector.shape_cast %3 : vector<1x128x128xbf16> to vector<128x128xbf16>
    %cst = arith.constant dense<0.000000e+00> : vector<64x128xf32>
    %5 = tpu.matmul %2, %4, %cst {dimension_numbers = #tpu.dot_dimension_numbers<[1], [0], [0], [1], [0, 0, 1, 1], [], []>} : vector<64x128xbf16>, vector<128x128xbf16>, vector<64x128xf32> -> vector<64x128xf32>
    %c0_6 = arith.constant 0 : index
    %c0_7 = arith.constant 0 : index
    %c1 = arith.constant 1 : index
    %c0_8 = arith.constant 0 : index
    %6 = vector.load %arg1[%c0_6, %c0_7, %c1, %c0_8] : memref<1x10x10x128xbf16, #tpu.memory_space<vmem>>, vector<1x8x8x128xbf16>
    %7 = vector.shape_cast %6 : vector<1x8x8x128xbf16> to vector<8x8x128xbf16>
    %8 = vector.shape_cast %7 : vector<8x8x128xbf16> to vector<64x128xbf16>
    %c1_9 = arith.constant 1 : index
    %c0_10 = arith.constant 0 : index
    %c0_11 = arith.constant 0 : index
    %9 = vector.load %arg2[%c1_9, %c0_10, %c0_11] : memref<9x128x128xbf16, #tpu.memory_space<vmem>>, vector<1x128x128xbf16>
    %10 = vector.shape_cast %9 : vector<1x128x128xbf16> to vector<128x128xbf16>
    %cst_12 = arith.constant dense<0.000000e+00> : vector<64x128xf32>
    %11 = tpu.matmul %8, %10, %cst_12 {dimension_numbers = #tpu.dot_dimension_numbers<[1], [0], [0], [1], [0, 0, 1, 1], [], []>} : vector<64x128xbf16>, vector<128x128xbf16>, vector<64x128xf32> -> vector<64x128xf32>
    %12 = arith.addf %5, %11 : vector<64x128xf32>
    %c0_13 = arith.constant 0 : index
    %c0_14 = arith.constant 0 : index
    %c2 = arith.constant 2 : index
    %c0_15 = arith.constant 0 : index
    %13 = vector.load %arg1[%c0_13, %c0_14, %c2, %c0_15] : memref<1x10x10x128xbf16, #tpu.memory_space<vmem>>, vector<1x8x8x128xbf16>
    %14 = vector.shape_cast %13 : vector<1x8x8x128xbf16> to vector<8x8x128xbf16>
    %15 = vector.shape_cast %14 : vector<8x8x128xbf16> to vector<64x128xbf16>
    %c2_16 = arith.constant 2 : index
    %c0_17 = arith.constant 0 : index
    %c0_18 = arith.constant 0 : index
    %16 = vector.load %arg2[%c2_16, %c0_17, %c0_18] : memref<9x128x128xbf16, #tpu.memory_space<vmem>>, vector<1x128x128xbf16>
    %17 = vector.shape_cast %16 : vector<1x128x128xbf16> to vector<128x128xbf16>
    %cst_19 = arith.constant dense<0.000000e+00> : vector<64x128xf32>
    %18 = tpu.matmul %15, %17, %cst_19 {dimension_numbers = #tpu.dot_dimension_numbers<[1], [0], [0], [1], [0, 0, 1, 1], [], []>} : vector<64x128xbf16>, vector<128x128xbf16>, vector<64x128xf32> -> vector<64x128xf32>
    %19 = arith.addf %12, %18 : vector<64x128xf32>
    %c0_20 = arith.constant 0 : index
    %c1_21 = arith.constant 1 : index
    %c0_22 = arith.constant 0 : index
    %c0_23 = arith.constant 0 : index
    %20 = vector.load %arg1[%c0_20, %c1_21, %c0_22, %c0_23] : memref<1x10x10x128xbf16, #tpu.memory_space<vmem>>, vector<1x8x8x128xbf16>
    %21 = vector.shape_cast %20 : vector<1x8x8x128xbf16> to vector<8x8x128xbf16>
    %22 = vector.shape_cast %21 : vector<8x8x128xbf16> to vector<64x128xbf16>
    %c3 = arith.constant 3 : index
    %c0_24 = arith.constant 0 : index
    %c0_25 = arith.constant 0 : index
    %23 = vector.load %arg2[%c3, %c0_24, %c0_25] : memref<9x128x128xbf16, #tpu.memory_space<vmem>>, vector<1x128x128xbf16>
    %24 = vector.shape_cast %23 : vector<1x128x128xbf16> to vector<128x128xbf16>
    %cst_26 = arith.constant dense<0.000000e+00> : vector<64x128xf32>
    %25 = tpu.matmul %22, %24, %cst_26 {dimension_numbers = #tpu.dot_dimension_numbers<[1], [0], [0], [1], [0, 0, 1, 1], [], []>} : vector<64x128xbf16>, vector<128x128xbf16>, vector<64x128xf32> -> vector<64x128xf32>
    %26 = arith.addf %19, %25 : vector<64x128xf32>
    %c0_27 = arith.constant 0 : index
    %c1_28 = arith.constant 1 : index
    %c1_29 = arith.constant 1 : index
    %c0_30 = arith.constant 0 : index
    %27 = vector.load %arg1[%c0_27, %c1_28, %c1_29, %c0_30] : memref<1x10x10x128xbf16, #tpu.memory_space<vmem>>, vector<1x8x8x128xbf16>
    %28 = vector.shape_cast %27 : vector<1x8x8x128xbf16> to vector<8x8x128xbf16>
    %29 = vector.shape_cast %28 : vector<8x8x128xbf16> to vector<64x128xbf16>
    %c4 = arith.constant 4 : index
    %c0_31 = arith.constant 0 : index
    %c0_32 = arith.constant 0 : index
    %30 = vector.load %arg2[%c4, %c0_31, %c0_32] : memref<9x128x128xbf16, #tpu.memory_space<vmem>>, vector<1x128x128xbf16>
    %31 = vector.shape_cast %30 : vector<1x128x128xbf16> to vector<128x128xbf16>
    %cst_33 = arith.constant dense<0.000000e+00> : vector<64x128xf32>
    %32 = tpu.matmul %29, %31, %cst_33 {dimension_numbers = #tpu.dot_dimension_numbers<[1], [0], [0], [1], [0, 0, 1, 1], [], []>} : vector<64x128xbf16>, vector<128x128xbf16>, vector<64x128xf32> -> vector<64x128xf32>
    %33 = arith.addf %26, %32 : vector<64x128xf32>
    %c0_34 = arith.constant 0 : index
    %c1_35 = arith.constant 1 : index
    %c2_36 = arith.constant 2 : index
    %c0_37 = arith.constant 0 : index
    %34 = vector.load %arg1[%c0_34, %c1_35, %c2_36, %c0_37] : memref<1x10x10x128xbf16, #tpu.memory_space<vmem>>, vector<1x8x8x128xbf16>
    %35 = vector.shape_cast %34 : vector<1x8x8x128xbf16> to vector<8x8x128xbf16>
    %36 = vector.shape_cast %35 : vector<8x8x128xbf16> to vector<64x128xbf16>
    %c5 = arith.constant 5 : index
    %c0_38 = arith.constant 0 : index
    %c0_39 = arith.constant 0 : index
    %37 = vector.load %arg2[%c5, %c0_38, %c0_39] : memref<9x128x128xbf16, #tpu.memory_space<vmem>>, vector<1x128x128xbf16>
    %38 = vector.shape_cast %37 : vector<1x128x128xbf16> to vector<128x128xbf16>
    %cst_40 = arith.constant dense<0.000000e+00> : vector<64x128xf32>
    %39 = tpu.matmul %36, %38, %cst_40 {dimension_numbers = #tpu.dot_dimension_numbers<[1], [0], [0], [1], [0, 0, 1, 1], [], []>} : vector<64x128xbf16>, vector<128x128xbf16>, vector<64x128xf32> -> vector<64x128xf32>
    %40 = arith.addf %33, %39 : vector<64x128xf32>
    %c0_41 = arith.constant 0 : index
    %c2_42 = arith.constant 2 : index
    %c0_43 = arith.constant 0 : index
    %c0_44 = arith.constant 0 : index
    %41 = vector.load %arg1[%c0_41, %c2_42, %c0_43, %c0_44] : memref<1x10x10x128xbf16, #tpu.memory_space<vmem>>, vector<1x8x8x128xbf16>
    %42 = vector.shape_cast %41 : vector<1x8x8x128xbf16> to vector<8x8x128xbf16>
    %43 = vector.shape_cast %42 : vector<8x8x128xbf16> to vector<64x128xbf16>
    %c6 = arith.constant 6 : index
    %c0_45 = arith.constant 0 : index
    %c0_46 = arith.constant 0 : index
    %44 = vector.load %arg2[%c6, %c0_45, %c0_46] : memref<9x128x128xbf16, #tpu.memory_space<vmem>>, vector<1x128x128xbf16>
    %45 = vector.shape_cast %44 : vector<1x128x128xbf16> to vector<128x128xbf16>
    %cst_47 = arith.constant dense<0.000000e+00> : vector<64x128xf32>
    %46 = tpu.matmul %43, %45, %cst_47 {dimension_numbers = #tpu.dot_dimension_numbers<[1], [0], [0], [1], [0, 0, 1, 1], [], []>} : vector<64x128xbf16>, vector<128x128xbf16>, vector<64x128xf32> -> vector<64x128xf32>
    %47 = arith.addf %40, %46 : vector<64x128xf32>
    %c0_48 = arith.constant 0 : index
    %c2_49 = arith.constant 2 : index
    %c1_50 = arith.constant 1 : index
    %c0_51 = arith.constant 0 : index
    %48 = vector.load %arg1[%c0_48, %c2_49, %c1_50, %c0_51] : memref<1x10x10x128xbf16, #tpu.memory_space<vmem>>, vector<1x8x8x128xbf16>
    %49 = vector.shape_cast %48 : vector<1x8x8x128xbf16> to vector<8x8x128xbf16>
    %50 = vector.shape_cast %49 : vector<8x8x128xbf16> to vector<64x128xbf16>
    %c7 = arith.constant 7 : index
    %c0_52 = arith.constant 0 : index
    %c0_53 = arith.constant 0 : index
    %51 = vector.load %arg2[%c7, %c0_52, %c0_53] : memref<9x128x128xbf16, #tpu.memory_space<vmem>>, vector<1x128x128xbf16>
    %52 = vector.shape_cast %51 : vector<1x128x128xbf16> to vector<128x128xbf16>
    %cst_54 = arith.constant dense<0.000000e+00> : vector<64x128xf32>
    %53 = tpu.matmul %50, %52, %cst_54 {dimension_numbers = #tpu.dot_dimension_numbers<[1], [0], [0], [1], [0, 0, 1, 1], [], []>} : vector<64x128xbf16>, vector<128x128xbf16>, vector<64x128xf32> -> vector<64x128xf32>
    %54 = arith.addf %47, %53 : vector<64x128xf32>
    %c0_55 = arith.constant 0 : index
    %c2_56 = arith.constant 2 : index
    %c2_57 = arith.constant 2 : index
    %c0_58 = arith.constant 0 : index
    %55 = vector.load %arg1[%c0_55, %c2_56, %c2_57, %c0_58] : memref<1x10x10x128xbf16, #tpu.memory_space<vmem>>, vector<1x8x8x128xbf16>
    %56 = vector.shape_cast %55 : vector<1x8x8x128xbf16> to vector<8x8x128xbf16>
    %57 = vector.shape_cast %56 : vector<8x8x128xbf16> to vector<64x128xbf16>
    %c8 = arith.constant 8 : index
    %c0_59 = arith.constant 0 : index
    %c0_60 = arith.constant 0 : index
    %58 = vector.load %arg2[%c8, %c0_59, %c0_60] : memref<9x128x128xbf16, #tpu.memory_space<vmem>>, vector<1x128x128xbf16>
    %59 = vector.shape_cast %58 : vector<1x128x128xbf16> to vector<128x128xbf16>
    %cst_61 = arith.constant dense<0.000000e+00> : vector<64x128xf32>
    %60 = tpu.matmul %57, %59, %cst_61 {dimension_numbers = #tpu.dot_dimension_numbers<[1], [0], [0], [1], [0, 0, 1, 1], [], []>} : vector<64x128xbf16>, vector<128x128xbf16>, vector<64x128xf32> -> vector<64x128xf32>
    %61 = arith.addf %54, %60 : vector<64x128xf32>
    %c0_62 = arith.constant 0 : index
    %c0_63 = arith.constant 0 : index
    %62 = vector.load %arg3[%c0_62, %c0_63] : memref<1x128xf32, #tpu.memory_space<vmem>>, vector<1x128xf32>
    %63 = vector.broadcast %62 : vector<1x128xf32> to vector<64x128xf32>
    %64 = arith.addf %61, %63 : vector<64x128xf32>
    %c0_64 = arith.constant 0 : index
    %c0_65 = arith.constant 0 : index
    %c0_66 = arith.constant 0 : index
    %65 = vector.load %arg4[%c0_64, %c0_65, %c0_66] : memref<1x64x32xbf16, #tpu.memory_space<vmem>>, vector<1x64x32xbf16>
    %66 = vector.shape_cast %65 : vector<1x64x32xbf16> to vector<64x32xbf16>
    %c0_67 = arith.constant 0 : index
    %c0_68 = arith.constant 0 : index
    %67 = vector.load %arg5[%c0_67, %c0_68] : memref<32x128xbf16, #tpu.memory_space<vmem>>, vector<32x128xbf16>
    %cst_69 = arith.constant dense<0.000000e+00> : vector<64x128xf32>
    %68 = tpu.matmul %66, %67, %cst_69 {dimension_numbers = #tpu.dot_dimension_numbers<[1], [0], [0], [1], [0, 0, 1, 1], [], []>} : vector<64x32xbf16>, vector<32x128xbf16>, vector<64x128xf32> -> vector<64x128xf32>
    %69 = arith.addf %64, %68 : vector<64x128xf32>
    %c0_70 = arith.constant 0 : index
    %c0_71 = arith.constant 0 : index
    %70 = vector.load %arg6[%c0_70, %c0_71] : memref<1x128xf32, #tpu.memory_space<vmem>>, vector<1x128xf32>
    %71 = vector.broadcast %70 : vector<1x128xf32> to vector<64x128xf32>
    %72 = arith.addf %69, %71 : vector<64x128xf32>
    %cst_72 = arith.constant 0.000000e+00 : f32
    %73 = vector.broadcast %cst_72 : f32 to vector<64x128xf32>
    %74 = arith.maximumf %72, %73 : vector<64x128xf32>
    %c0_73 = arith.constant 0 : index
    %c0_74 = arith.constant 0 : index
    %c0_75 = arith.constant 0 : index
    %75 = vector.load %arg7[%c0_73, %c0_74, %c0_75] : memref<1x64x128xf32, #tpu.memory_space<vmem>>, vector<1x64x128xf32>
    %76 = vector.shape_cast %75 : vector<1x64x128xf32> to vector<64x128xf32>
    %77 = vector.shape_cast %74 : vector<64x128xf32> to vector<1x64x128xf32>
    tpu.vector_store %arg7[%c0_73, %c0_74, %c0_75], %77 {strides = array<i32>} : memref<1x64x128xf32, #tpu.memory_space<vmem>>, vector<1x64x128xf32>,
    return
  }
  func.func @transform_0(%arg0: i32) -> (i32, i32, i32, i32) {
    %c0_i32 = arith.constant 0 : i32
    %c0_i32_0 = arith.constant 0 : i32
    %c0_i32_1 = arith.constant 0 : i32
    %c0_i32_2 = arith.constant 0 : i32
    return %arg0, %c0_i32, %c0_i32_0, %c0_i32_1 : i32, i32, i32, i32
  }
  func.func @transform_1(%arg0: i32) -> (i32, i32, i32) {
    %c0_i32 = arith.constant 0 : i32
    %c0_i32_0 = arith.constant 0 : i32
    %c0_i32_1 = arith.constant 0 : i32
    %c0_i32_2 = arith.constant 0 : i32
    return %c0_i32, %c0_i32_0, %c0_i32_1 : i32, i32, i32
  }
  func.func @transform_2(%arg0: i32) -> (i32, i32) {
    %c0_i32 = arith.constant 0 : i32
    %c0_i32_0 = arith.constant 0 : i32
    %c0_i32_1 = arith.constant 0 : i32
    return %c0_i32, %c0_i32_0 : i32, i32
  }
  func.func @transform_3(%arg0: i32) -> (i32, i32, i32) {
    %c0_i32 = arith.constant 0 : i32
    %c0_i32_0 = arith.constant 0 : i32
    %c0_i32_1 = arith.constant 0 : i32
    return %arg0, %c0_i32, %c0_i32_0 : i32, i32, i32
  }
  func.func @transform_4(%arg0: i32) -> (i32, i32) {
    %c0_i32 = arith.constant 0 : i32
    %c0_i32_0 = arith.constant 0 : i32
    %c0_i32_1 = arith.constant 0 : i32
    return %c0_i32, %c0_i32_0 : i32, i32
  }
  func.func @transform_5(%arg0: i32) -> (i32, i32) {
    %c0_i32 = arith.constant 0 : i32
    %c0_i32_0 = arith.constant 0 : i32
    %c0_i32_1 = arith.constant 0 : i32
    return %c0_i32, %c0_i32_0 : i32, i32
  }
  func.func @transform_6(%arg0: i32) -> (i32, i32, i32) {
    %c0_i32 = arith.constant 0 : i32
    %c0_i32_0 = arith.constant 0 : i32
    %c0_i32_1 = arith.constant 0 : i32
    return %arg0, %c0_i32, %c0_i32_0 : i32, i32, i32
  }
}

</mosaic_0001>

<bundles_post_ra>
// kernel: basic_block_forward.2
= control target key start
LH: loop header
LB: loop body
LE: loop exit
PB: predicated region body
PF: predicated region fallthrough
CT: control target
= control target key end

     0   :  { %s2342_s12 = smov 0   ;;  %s2608_s0 = inlined_call_operand.vmem [shape: bf16[2,36,9,32], index: 0, kind: input, shape index: {}]   ;;  %s2609_s1 = inlined_call_operand.vmem [shape: bf16[9,32,128], index: 1, kind: input, shape index: {}]   ;;  %s2610_s2 = inlined_call_operand.vmem [shape: f32[1,128], index: 2, kind: input, shape index: {}]   ;;  %s2611_s3 = inlined_call_operand.vmem [shape: bf16[2,64,128], index: 3, kind: output, shape index: {}]  }
   0x1 LB: > { %s1788_s13 = sadd.s32 4294967295, %s2320_s12   ;;  %p1792_p0 = scmp.ge.s32.totalorder %s2320_s12, 1  ;;  %s2320_s12 = sphi %s2342_s12, %s13_s12  }
   0x2   : > { %p137_p1 = scmp.lt.s32.totalorder %s2320_s12, 3 }
   0x4   : > { %p138_p2 = pnand %p1792_p0, %p137_p1 }
   0x5   : > { %v2272_v0 = vld [vmem:[%s2609_s1 + $0x10] sm:$0xff] (!%p138_p2)   ;;  %p161_p3 = scmp.lt.s32.totalorder (!%p138_p2), %s1788_s13, 1  ;;  %v2356_v1 = vld [vmem:[%s2609_s1 + $0x40] sm:$0xff] (!%p138_p2)   ;;  %v2274_v2 = vld [vmem:[%s2609_s1 + $0x18] sm:$0xff] (!%p138_p2)   ;;  %vm230_vm0 = vcmask (!%p138_p2), 261120  }
   0x6   : > { %141 = sbr.rel (%p138_p2) target bundleno = 319 (0x13f), region = 32  ;;  %2087 = vmatprep.subr.bf16.mxu1 (!%p138_p2), %v2272_v0  ;;  %2135 = vmatprep.subr.bf16.mxu0 (!%p138_p2), %v2356_v1  ;;  %v2367_v3 = vld [vmem:[%s2609_s1 + $0x48] sm:$0xff] (!%p138_p2)   ;;  %v2279_v4 = vld [vmem:[%s2609_s1] sm:$0xff] (!%p138_p2)   ;;  %v2281_v5 = vld [vmem:[%s2609_s1 + $0x50] sm:$0xff] (!%p138_p2)   ;;  %vm433_vm1 = vsmask.f32 (!%p138_p2), 3328 }
   0x7   : > { %2088 = vmatpush3.bf16.msra.mxu1 (!%p138_p2), %v2272_v0  ;;  %2136 = vmatpush3.bf16.msra.mxu0 (!%p138_p2), %v2356_v1  ;;  %v2282_v8 = vld [vmem:[%s2609_s1 + $0x58] sm:$0xff] (!%p138_p2)   ;;  %v2285_v13 = vld [vmem:[%s2609_s1 + $0x8] sm:$0xff] (!%p138_p2)   ;;  %vm434_vm2 = vsmask.f32 (!%p138_p2), 7440  ;;  %v2408_v23 = vld [vmem:[%s2609_s1 + $0x60] sm:$0xff] (!%p138_p2)  }
   0x8   : > { %2089 = vmatprep.subr.bf16.mxu1 (!%p138_p2), %v2274_v2  ;;  %2137 = vmatprep.subr.bf16.mxu0 (!%p138_p2), %v2367_v3  ;;  %v2289_v28 = vld [vmem:[%s2609_s1 + $0x20] sm:$0xff] (!%p138_p2)   ;;  %vm2421_vm3 = vmor (!%p138_p2), %vm433_vm1, %vm434_vm2  ;;  %v2293_v55 = vld [vmem:[%s2609_s1 + $0x28] sm:$0xff] (!%p138_p2)  }
   0xb   : > { %2090 = vmatpush3.bf16.msra.mxu1 (!%p138_p2), %v2274_v2  ;;  %2138 = vmatpush3.bf16.msra.mxu0 (!%p138_p2), %v2367_v3 }
   0xc   : > { %2099 = vmatprep.subr.bf16.mxu1 (!%p138_p2), %v2279_v4  ;;  %2147 = vmatprep.subr.bf16.mxu0 (!%p138_p2), %v2281_v5 }
   0xd   : > { %s2615_s13 = smov (!%p161_p3, %s1788_s13), 1 }
   0xe   : > { %s2263_s22 = smul.u32 288, %s2615_s13  ;;  %s2001_s4 = sshll.u32 %s2615_s13, 5 }
   0xf   : > { %s170_s7 = scalar_lea.vmem %s2611_s3, %s2001_s4 }
  0x10   : > { %s2381_s29 = scalar_lea.vmem %s2608_s0, %s2263_s22 }
  0x11   : > { %v2276_v6 = vld [vmem:[%s2381_s29 + $0x48] ss:$8 sps:$4 sm:$0xff]   ;;  %v2277_v7 = vld [vmem:[%s2381_s29 + $0xd8] ss:$8 sps:$4 sm:$0xff]   ;;  %v1887_v15 = vld [vmem:[%s2381_s29 + $0x94] sm:$0x1] }
  0x12   : > { %2091 = vmatprep.mubr.msk.bf16.mxu1 %vm230_vm0, %v2276_v6  ;;  %v2278_v9 = vld [vmem:[%s2381_s29 + $0x58] ss:$8 sps:$4 sm:$0xff]   ;;  %2139 = vmatprep.mubr.msk.bf16.mxu0 %vm230_vm0, %v2277_v7  ;;  %v2280_v10 = vld [vmem:[%s2381_s29 + $0xe8] ss:$8 sps:$4 sm:$0xff]   ;;  %v1889_v19 = vld [vmem:[%s2381_s29 + $0x9c] sm:$0x1] }
  0x13   : > { %2092 = vmatmul.mubr.msk.bf16.vlgmr.msra.gmra.mrb[0].mxu1 %vm230_vm0, %v2278_v9  ;;  %v2283_v11 = vld [vmem:[%s2381_s29 + $0x68] ss:$8 sps:$4 sm:$0xff]   ;;  %2140 = vmatmul.mubr.msk.bf16.vlgmr.msra.gmra.mrb[0].mxu0 %vm230_vm0, %v2280_v10  ;;  %v2284_v12 = vld [vmem:[%s2381_s29 + $0x78] ss:$8 sps:$4 sm:$0xff]   ;;  %v950_v20 = vshll.u32 %v1887_v15, 16  ;;  %v964_v26 = vshll.u32 %v1889_v19, 16 }
  0x14   : > { %2100 = vmatpush3.bf16.msra.mxu1 %v2279_v4  ;;  %2148 = vmatpush3.bf16.msra.mxu0 %v2281_v5  ;;  %v1886_v14 = vld [vmem:[%s2381_s29 + $0x90] sm:$0xf]  ;;  %v1888_v16 = vld [vmem:[%s2381_s29 + $0x98] sm:$0xf]  ;;  %v1890_v27 = vld [vmem:[%s2381_s29 + $0xa0] sm:$0xf] }
  0x15   : > { %2095 = vmatprep.mubr.msk.bf16.mxu1 %vm230_vm0, %v2283_v11  ;;  %2149 = vmatprep.subr.bf16.mxu0 %v2282_v8  ;;  %v941_v17 = vshrl.u32 %v1886_v14, 16  ;;  %v944_v18 = vshll.u32 %v1886_v14, 16  ;;  %v955_v21 = vshrl.u32 %v1888_v16, 16  ;;  %v958_v22 = vshll.u32 %v1888_v16, 16  ;;  %v1891_v32 = vld [vmem:[%s2381_s29 + $0xa4] sm:$0x1] }
  0x16   : > { %2101 = vmatprep.subr.bf16.mxu1 %v2285_v13  ;;  %v952_v29 = vrot.slane %v950_v20, 5  ;;  %v969_v33 = vshrl.u32 %v1890_v27, 16  ;;  %v966_v35 = vrot.slane %v964_v26, 5  ;;  %v1892_v36 = vld [vmem:[%s2381_s29 + $0xa8] sm:$0xf]  ;;  %v972_v38 = vshll.u32 %v1890_v27, 16 }
  0x17   : > { %v943_v24 = vrot.slane %v941_v17, 4  ;;  %v946_v25 = vrot.slane %v944_v18, 5  ;;  %v957_v30 = vrot.slane %v955_v21, 4  ;;  %v960_v31 = vrot.slane %v958_v22, 5  ;;  %v1893_v37 = vld [vmem:[%s2381_s29 + $0xac] sm:$0x1] }
  0x18   : > { %2102 = vmatpush3.bf16.msra.mxu1 %v2285_v13  ;;  %2150 = vmatpush3.bf16.msra.mxu0 %v2282_v8  ;;  %v971_v41 = vrot.slane %v969_v33, 4  ;;  %v978_v42 = vshll.u32 %v1891_v32, 16  ;;  %v983_v43 = vshrl.u32 %v1892_v36, 16  ;;  %v974_v45 = vrot.slane %v972_v38, 5  ;;  %v2287_v54 = vld [vmem:[%s2381_s29] ss:$8 sps:$4 sm:$0xff]  }
  0x19   : > { %2159 = vmatprep.subr.bf16.mxu0 %v2408_v23  ;;  %v947_v34 = vor.u32 %v946_v25, %v943_v24  ;;  %2111 = vmatprep.subr.bf16.mxu1 %v2289_v28  ;;  %v961_v40 = vor.u32 %v960_v31, %v957_v30  ;;  %v986_v46 = vshll.u32 %v1892_v36, 16  ;;  %v992_v47 = vshll.u32 %v1893_v37, 16  ;;  %v2288_v57 = vld [vmem:[%s2381_s29 + $0x10] ss:$8 sps:$4 sm:$0xff]   ;;  %v1895_v63 = vld [vmem:[%s2381_s29 + $0xb4] sm:$0x1] }
  0x1a   : > { %v980_v49 = vrot.slane %v978_v42, 5  ;;  %v985_v50 = vrot.slane %v983_v43, 4  ;;  %v975_v52 = vor.u32 %v974_v45, %v971_v41  ;;  %v1894_v62 = vld [vmem:[%s2381_s29 + $0xb0] sm:$0xf]  ;;  %v1896_v0 = vld [vmem:[%s2381_s29 + $0xb8] sm:$0xf] }
  0x1b   : > { %2096 = vmatmul.mubr.msk.bf16.gmra.mrb[4].mxu1 %vm230_vm0, %v2284_v12  ;;  %v948_v44 = vrot.slane %v947_v34, 4  ;;  %v962_v48 = vrot.slane %v961_v40, 4  ;;  %v988_v53 = vrot.slane %v986_v46, 5  ;;  %v994_v61 = vrot.slane %v992_v47, 5  ;;  %v1897_v5 = vld [vmem:[%s2381_s29 + $0xbc] sm:$0x1] }
  0x1c   : > { %v976_v59 = vrot.slane %v975_v52, 4  ;;  %2103 = vmatprep.mubr.msk.bf16.mxu1 %vm230_vm0, %v2287_v54  ;;  %v997_v6 = vshrl.u32 %v1894_v62, 16  ;;  %v1000_v7 = vshll.u32 %v1894_v62, 16  ;;  %v2446_v8 = vld [vmem:[%s2609_s1 + $0x30] sm:$0xff]   ;;  %v1006_v9 = vshll.u32 %v1895_v63, 16  ;;  %v2290_v25 = vld [vmem:[%s2609_s1 + $0x68] sm:$0xff]  }
  0x1d   : > { %v953_v51 = vsel %vm2421_vm3, %v948_v44, %v952_v29  ;;  %v967_v56 = vsel %vm2421_vm3, %v962_v48, %v966_v35  ;;  %v989_v60 = vor.u32 %v988_v53, %v985_v50  ;;  %v1011_v10 = vshrl.u32 %v1896_v0, 16  ;;  %v1898_v13 = vld [vmem:[%s2381_s29 + $0xc0] sm:$0xf]  ;;  %v1899_v17 = vld [vmem:[%s2381_s29 + $0xc4] sm:$0x1]  ;;  %v2463_v42 = vld [vmem:[%s2609_s1 + $0x70] sm:$0xff]  }
  0x1e   : > { %v1906_v58 = vcombine.low %v953_v51, %v967_v56  ;;  %v981_v2 = vsel %vm2421_vm3, %v976_v59, %v980_v49  ;;  %v1014_v11 = vshll.u32 %v1896_v0, 16  ;;  %v1020_v12 = vshll.u32 %v1897_v5, 16  ;;  %v1900_v18 = vld [vmem:[%s2381_s29 + $0xc8] sm:$0xf]  ;;  %v1901_v24 = vld [vmem:[%s2381_s29 + $0xcc] sm:$0x1] }
  0x1f   : > { %v990_v4 = vrot.slane %v989_v60, 4  ;;  %v999_v15 = vrot.slane %v997_v6, 4  ;;  %v1002_v16 = vrot.slane %v1000_v7, 5  ;;  %v1008_v20 = vrot.slane %v1006_v9, 5  ;;  %v2291_v46 = vld [vmem:[%s2381_s29 + $0x20] ss:$8 sps:$4 sm:$0xff]  }
  0x20   : > { %2151 = vmatprep.mubr.msk.bf16.mxu0 %vm230_vm0, %v1906_v58  ;;  %v1013_v21 = vrot.slane %v1011_v10, 4  ;;  %v1016_v22 = vrot.slane %v1014_v11, 5  ;;  %v1022_v27 = vrot.slane %v1020_v12, 5  ;;  %v1028_v29 = vshll.u32 %v1898_v13, 16  ;;  %v2292_v49 = vld [vmem:[%s2381_s29 + $0x30] ss:$8 sps:$4 sm:$0xff]  }
  0x21   : > { %v995_v14 = vsel %vm2421_vm3, %v990_v4, %v994_v61  ;;  %v1003_v26 = vor.u32 %v1002_v16, %v999_v15  ;;  %v1034_v31 = vshll.u32 %v1899_v17, 16  ;;  %v1039_v32 = vshrl.u32 %v1900_v18, 16  ;;  %v2294_v54 = vld [vmem:[%s2381_s29 + $0x8] ss:$8 sps:$4 sm:$0xff]   ;;  %v417_v56 = vld [vmem:[%s2381_s29] sm:$0xf] }
  0x22   : > { %v1907_v19 = vcombine.low %v981_v2, %v995_v14  ;;  %v1017_v30 = vor.u32 %v1016_v22, %v1013_v21  ;;  %v1042_v33 = vshll.u32 %v1900_v18, 16  ;;  %v1030_v36 = vrot.slane %v1028_v29, 5  ;;  %v418_v58 = vld [vmem:[%s2381_s29 + $0x4] sm:$0x1]  ;;  %v419_v59 = vld [vmem:[%s2381_s29 + $0x8] sm:$0xf] }
  0x23   : > { %2104 = vmatmul.mubr.msk.bf16.vlgmr.msra.gmra.mrb[0].mxu1 %vm230_vm0, %v2288_v57  ;;  %v1004_v34 = vrot.slane %v1003_v26, 4  ;;  %v1048_v37 = vshll.u32 %v1901_v24, 16  ;;  %v1041_v40 = vrot.slane %v1039_v32, 4  ;;  %v1036_v44 = vrot.slane %v1034_v31, 5  ;;  %v420_v60 = vld [vmem:[%s2381_s29 + $0xc] sm:$0x1] }
  0x24   : > { %2112 = vmatpush3.bf16.msra.mxu1 %v2289_v28  ;;  %v1025_v28 = vshrl.u32 %v1898_v13, 16  ;;  %2152 = vmatmul.mubr.msk.bf16.vlgmr.msra.gmra.mrb[0].mxu0 %vm230_vm0, %v1907_v19  ;;  %v1018_v38 = vrot.slane %v1017_v30, 4  ;;  %v1044_v41 = vrot.slane %v1042_v33, 5  ;;  %v437_v61 = vshrl.u32 %v417_v56, 16  ;;  %v421_v2 = vld [vmem:[%s2381_s29 + $0x10] sm:$0xf] }
  0x25   : > { %2113 = vmatprep.subr.bf16.mxu1 %v2293_v55  ;;  %2160 = vmatpush3.bf16.msra.mxu0 %v2408_v23  ;;  %v1009_v43 = vsel %vm2421_vm3, %v1004_v34, %v1008_v20  ;;  %v1050_v45 = vrot.slane %v1048_v37, 5  ;;  %v440_v62 = vshll.u32 %v417_v56, 16  ;;  %v446_v63 = vshll.u32 %v418_v58, 16  ;;  %v422_v6 = vld [vmem:[%s2381_s29 + $0x14] sm:$0x1]  ;;  %v2300_v31 = vld [vmem:[%s2609_s1 + $0x78] sm:$0xff]  }
  0x26   : > { %v1027_v35 = vrot.slane %v1025_v28, 4  ;;  %2161 = vmatprep.subr.bf16.mxu0 %v2290_v25  ;;  %v1023_v47 = vsel %vm2421_vm3, %v1018_v38, %v1022_v27  ;;  %v1045_v48 = vor.u32 %v1044_v41, %v1041_v40  ;;  %2107 = vmatprep.mubr.msk.bf16.mxu1 %vm230_vm0, %v2291_v46  ;;  %v451_v0 = vshrl.u32 %v419_v59, 16  ;;  %v423_v7 = vld [vmem:[%s2381_s29 + $0x18] sm:$0xf]  ;;  %v424_v13 = vld [vmem:[%s2381_s29 + $0x1c] sm:$0x1] }
  0x27   : > { %v1908_v50 = vcombine.low %v1009_v43, %v1023_v47  ;;  %v454_v4 = vshll.u32 %v419_v59, 16  ;;  %v460_v5 = vshll.u32 %v420_v60, 16  ;;  %v439_v9 = vrot.slane %v437_v61, 4  ;;  %v2295_v14 = vld [vmem:[%s2381_s29 + $0x18] ss:$8 sps:$4 sm:$0xff]  }
  0x28   : > { %2114 = vmatpush3.bf16.msra.mxu1 %v2293_v55  ;;  %v1031_v23 = vor.u32 %v1030_v36, %v1027_v35  ;;  %v1046_v52 = vrot.slane %v1045_v48, 4  ;;  %v442_v10 = vrot.slane %v440_v62, 5  ;;  %v448_v11 = vrot.slane %v446_v63, 5  ;;  %v2298_v35 = vld [vmem:[%s2381_s29 + $0x28] ss:$8 sps:$4 sm:$0xff]  }
  0x29   : > { %2123 = vmatprep.subr.bf16.mxu1 %v2446_v8  ;;  %2162 = vmatpush3.bf16.msra.mxu0 %v2290_v25  ;;  %v453_v12 = vrot.slane %v451_v0, 4  ;;  %v456_v15 = vrot.slane %v454_v4, 5  ;;  %v462_v16 = vrot.slane %v460_v5, 5  ;;  %v465_v17 = vshrl.u32 %v421_v2, 16  ;;  %v425_v43 = vld [vmem:[%s2381_s29 + $0x20] sm:$0xf] }
  0x2a   : > { %v1032_v51 = vrot.slane %v1031_v23, 4  ;;  %2171 = vmatprep.subr.bf16.mxu0 %v2463_v42  ;;  %2155 = vmatprep.mubr.msk.bf16.mxu0 %vm230_vm0, %v1908_v50  ;;  %v1051_v55 = vsel %vm2421_vm3, %v1046_v52, %v1050_v45  ;;  %v468_v18 = vshll.u32 %v421_v2, 16  ;;  %v443_v19 = vor.u32 %v442_v10, %v439_v9  ;;  %v426_v45 = vld [vmem:[%s2381_s29 + $0x24] sm:$0x1]  ;;  %v427_v46 = vld [vmem:[%s2381_s29 + $0x28] sm:$0xf] }
  0x2b   : > { %2108 = vmatmul.mubr.msk.bf16.gmra.mrb[4].mxu1 %vm230_vm0, %v2292_v49  ;;  %v474_v20 = vshll.u32 %v422_v6, 16  ;;  %v479_v21 = vshrl.u32 %v423_v7, 16  ;;  %v482_v22 = vshll.u32 %v423_v7, 16  ;;  %v457_v24 = vor.u32 %v456_v15, %v453_v12  ;;  %v2299_v49 = vld [vmem:[%s2381_s29 + $0x38] ss:$8 sps:$4 sm:$0xff]  }
  0x2c   : > { %v1037_v53 = vsel %vm2421_vm3, %v1032_v51, %v1036_v44  ;;  %v467_v25 = vrot.slane %v465_v17, 4  ;;  %v470_v26 = vrot.slane %v468_v18, 5  ;;  %v488_v27 = vshll.u32 %v424_v13, 16  ;;  %v428_v50 = vld [vmem:[%s2381_s29 + $0x2c] sm:$0x1]  ;;  %v2301_v0 = vld [vmem:[%s2609_s1 + $0x38] sm:$0xff]  }
  0x2d   : > { %v1909_v57 = vcombine.low %v1037_v53, %v1051_v55  ;;  %v444_v28 = vrot.slane %v443_v19, 4  ;;  %v481_v29 = vrot.slane %v479_v21, 4  ;;  %v484_v30 = vrot.slane %v482_v22, 5  ;;  %v429_v58 = vld [vmem:[%s2381_s29 + $0x30] sm:$0xf] }
  0x2e   : > { %v458_v32 = vrot.slane %v457_v24, 4  ;;  %v471_v33 = vor.u32 %v470_v26, %v467_v25  ;;  %v476_v34 = vrot.slane %v474_v20, 5  ;;  %v490_v38 = vrot.slane %v488_v27, 5  ;;  %v430_v63 = vld [vmem:[%s2381_s29 + $0x34] sm:$0x1] }
  0x2f   : > { %2156 = vmatmul.mubr.msk.bf16.gmra.mrb[4].mxu0 %vm230_vm0, %v1909_v57  ;;  %v449_v36 = vsel %vm2421_vm3, %v444_v28, %v448_v11  ;;  %v485_v37 = vor.u32 %v484_v30, %v481_v29  ;;  %v493_v47 = vshrl.u32 %v425_v43, 16  ;;  %v496_v51 = vshll.u32 %v425_v43, 16  ;;  %v431_v5 = vld [vmem:[%s2381_s29 + $0x38] sm:$0xf]  ;;  %v432_v6 = vld [vmem:[%s2381_s29 + $0x3c] sm:$0x1] }
  0x30   : > { %2163 = vmatprep.mubr.msk.bf16.mxu0 %vm230_vm0, %v2294_v54  ;;  %v463_v40 = vsel %vm2421_vm3, %v458_v32, %v462_v16  ;;  %v472_v41 = vrot.slane %v471_v33, 4  ;;  %v502_v52 = vshll.u32 %v426_v45, 16  ;;  %v507_v53 = vshrl.u32 %v427_v46, 16  ;;  %v2302_v26 = vld [vmem:[%s2381_s29 + $0x50] ss:$8 sps:$4 sm:$0xff]   ;;  %v2309_v33 = vld [vmem:[%s2609_s1 + $0x88] sm:$0xff]  }
  0x31   : > { %v1832_v23 = vcombine.low %v449_v36, %v463_v40  ;;  %v486_v44 = vrot.slane %v485_v37, 4  ;;  %v495_v55 = vrot.slane %v493_v47, 4  ;;  %v510_v56 = vshll.u32 %v427_v46, 16  ;;  %v2303_v29 = vld [vmem:[%s2381_s29 + $0x60] ss:$8 sps:$4 sm:$0xff]  }
  0x32   : > { %v477_v48 = vsel %vm2421_vm3, %v472_v41, %v476_v34  ;;  %v516_v57 = vshll.u32 %v428_v50, 16  ;;  %v498_v60 = vrot.slane %v496_v51, 5  ;;  %v504_v61 = vrot.slane %v502_v52, 5  ;;  %v2307_v37 = vld [vmem:[%s2381_s29 + $0x70] ss:$8 sps:$4 sm:$0xff]  }
  0x33   : > { %2115 = vmatprep.mubr.msk.bf16.mxu1 %vm230_vm0, %v1832_v23  ;;  %v491_v54 = vsel %vm2421_vm3, %v486_v44, %v490_v38  ;;  %v509_v62 = vrot.slane %v507_v53, 4  ;;  %v512_v2 = vrot.slane %v510_v56, 5  ;;  %v521_v9 = vshrl.u32 %v429_v58, 16  ;;  %v2308_v40 = vld [vmem:[%s2381_s29 + $0x80] ss:$8 sps:$4 sm:$0xff]  }
  0x34   : > { %v1833_v59 = vcombine.low %v477_v48, %v491_v54  ;;  %v518_v4 = vrot.slane %v516_v57, 5  ;;  %v499_v7 = vor.u32 %v498_v60, %v495_v55  ;;  %v524_v10 = vshll.u32 %v429_v58, 16  ;;  %v1960_v41 = vld [vmem:[%s2381_s29 + $0x8] sm:$0xf]  ;;  %v1961_v43 = vld [vmem:[%s2381_s29 + $0xc] sm:$0x1] }
  0x35   : > { %v530_v11 = vshll.u32 %v430_v63, 16  ;;  %v513_v12 = vor.u32 %v512_v2, %v509_v62  ;;  %v535_v13 = vshrl.u32 %v431_v5, 16  ;;  %v544_v15 = vshll.u32 %v432_v6, 16  ;;  %v2306_v23 = vld [vmem:[%s2381_s29 + $0xa0] ss:$8 sps:$4 sm:$0xff]  }
  0x36   : > { %2116 = vmatmul.mubr.msk.bf16.vlgmr.msra.gmra.mrb[0].mxu1 %vm230_vm0, %v1833_v59  ;;  %v500_v16 = vrot.slane %v499_v7, 4  ;;  %v523_v17 = vrot.slane %v521_v9, 4  ;;  %v526_v18 = vrot.slane %v524_v10, 5  ;;  %v1962_v44 = vld [vmem:[%s2381_s29 + $0x10] sm:$0xf]  ;;  %v1445_v46 = vshrl.u32 %v1960_v41, 16 }
  0x37   : > { %2164 = vmatmul.mubr.msk.bf16.vlgmr.msra.gmra.mrb[0].mxu0 %vm230_vm0, %v2295_v14  ;;  %2124 = vmatpush3.bf16.msra.mxu1 %v2446_v8  ;;  %v538_v14 = vshll.u32 %v431_v5, 16  ;;  %v532_v19 = vrot.slane %v530_v11, 5  ;;  %v514_v20 = vrot.slane %v513_v12, 4  ;;  %v537_v21 = vrot.slane %v535_v13, 4  ;;  %v1963_v45 = vld [vmem:[%s2381_s29 + $0x14] sm:$0x1] }
  0x38   : > { %2172 = vmatpush3.bf16.msra.mxu0 %v2463_v42  ;;  %2167 = vmatprep.mubr.msk.bf16.mxu0 %vm230_vm0, %v2298_v35  ;;  %v2304_v42 = vld [vmem:[%s2609_s1 + $0x80] sm:$0xff]   ;;  %v546_v24 = vrot.slane %v544_v15, 5  ;;  %v505_v8 = vsel %vm2421_vm3, %v500_v16, %v504_v61  ;;  %v527_v25 = vor.u32 %v526_v18, %v523_v17  ;;  %v2305_v35 = vld [vmem:[%s2381_s29 + $0x90] ss:$8 sps:$4 sm:$0xff]   ;;  %v1448_v47 = vshll.u32 %v1960_v41, 16 }
  0x39   : > { %2173 = vmatprep.subr.bf16.mxu0 %v2300_v31  ;;  %2125 = vmatprep.subr.bf16.mxu1 %v2301_v0  ;;  %v540_v22 = vrot.slane %v538_v14, 5  ;;  %v519_v27 = vsel %vm2421_vm3, %v514_v20, %v518_v4  ;;  %v2310_v48 = vld [vmem:[%s2381_s29 + $0xb0] ss:$8 sps:$4 sm:$0xff]   ;;  %v1459_v50 = vshrl.u32 %v1962_v44, 16  ;;  %v1462_v51 = vshll.u32 %v1962_v44, 16 }
  0x3a   : > { %v1834_v30 = vcombine.low %v505_v8, %v519_v27  ;;  %v1468_v52 = vshll.u32 %v1963_v45, 16  ;;  %v1964_v53 = vld [vmem:[%s2381_s29 + $0x18] sm:$0xf]  ;;  %v1450_v54 = vrot.slane %v1448_v47, 5  ;;  %v1965_v55 = vld [vmem:[%s2381_s29 + $0x1c] sm:$0x1] }
  0x3b   : > { %v541_v28 = vor.u32 %v540_v22, %v537_v21  ;;  %2126 = vmatpush3.bf16.msra.mxu1 %v2301_v0  ;;  %v1966_v56 = vld [vmem:[%s2381_s29 + $0x20] sm:$0xf]  ;;  %v1461_v58 = vrot.slane %v1459_v50, 4  ;;  %v1464_v59 = vrot.slane %v1462_v51, 5  ;;  %v1967_v61 = vld [vmem:[%s2381_s29 + $0x24] sm:$0x1] }
  0x3c   : > { %2174 = vmatpush3.bf16.msra.mxu0 %v2300_v31  ;;  %v528_v31 = vrot.slane %v527_v25, 4  ;;  %2195 = vmatprep.subr.bf16.mxu1 %v2356_v1  ;;  %v1470_v60 = vrot.slane %v1468_v52, 5  ;;  %v1473_v63 = vshrl.u32 %v1964_v53, 16  ;;  %v1476_v0 = vshll.u32 %v1964_v53, 16  ;;  %v1968_v17 = vld [vmem:[%s2381_s29 + $0x28] sm:$0xf] }
  0x3d   : > { %2183 = vmatprep.subr.bf16.mxu0 %v2304_v42  ;;  %v542_v32 = vrot.slane %v541_v28, 4  ;;  %2119 = vmatprep.mubr.msk.bf16.mxu1 %vm230_vm0, %v1834_v30  ;;  %v1482_v2 = vshll.u32 %v1965_v55, 16  ;;  %v1465_v4 = vor.u32 %v1464_v59, %v1461_v58  ;;  %v1487_v5 = vshrl.u32 %v1966_v56, 16  ;;  %v2311_v18 = vld [vmem:[%s2381_s29 + $0xc0] ss:$8 sps:$4 sm:$0xff]  }
  0x3e   : > { %v533_v34 = vsel %vm2421_vm3, %v528_v31, %v532_v19  ;;  %v1490_v6 = vshll.u32 %v1966_v56, 16  ;;  %v1496_v7 = vshll.u32 %v1967_v61, 16  ;;  %v1475_v10 = vrot.slane %v1473_v63, 4  ;;  %v1969_v21 = vld [vmem:[%s2381_s29 + $0x2c] sm:$0x1] }
  0x3f   : > { %2168 = vmatmul.mubr.msk.bf16.gmra.mrb[4].mxu0 %vm230_vm0, %v2299_v49  ;;  %v547_v36 = vsel %vm2421_vm3, %v542_v32, %v546_v24  ;;  %v1454_v49 = vshll.u32 %v1961_v43, 16  ;;  %v1478_v11 = vrot.slane %v1476_v0, 5  ;;  %v1484_v12 = vrot.slane %v1482_v2, 5  ;;  %v1970_v22 = vld [vmem:[%s2381_s29 + $0x30] sm:$0xf] }
  0x40   : > { %2175 = vmatprep.mubr.msk.bf16.mxu0 %vm230_vm0, %v2302_v26  ;;  %v1835_v38 = vcombine.low %v533_v34, %v547_v36  ;;  %v1466_v13 = vrot.slane %v1465_v4, 4  ;;  %v1489_v14 = vrot.slane %v1487_v5, 4  ;;  %v1492_v15 = vrot.slane %v1490_v6, 5  ;;  %v1971_v24 = vld [vmem:[%s2381_s29 + $0x34] sm:$0x1] }
  0x41   : > { %v1456_v57 = vrot.slane %v1454_v49, 5  ;;  %v1498_v16 = vrot.slane %v1496_v7, 5  ;;  %v1479_v20 = vor.u32 %v1478_v11, %v1475_v10  ;;  %v1501_v25 = vshrl.u32 %v1968_v17, 16  ;;  %v1972_v36 = vld [vmem:[%s2381_s29 + $0x38] sm:$0xf] }
  0x42   : > { %2120 = vmatmul.mubr.msk.bf16.gmra.mrb[4].mxu1 %vm230_vm0, %v1835_v38  ;;  %v1493_v8 = vor.u32 %v1492_v15, %v1489_v14  ;;  %v1504_v26 = vshll.u32 %v1968_v17, 16  ;;  %v1510_v30 = vshll.u32 %v1969_v21, 16  ;;  %v1515_v31 = vshrl.u32 %v1970_v22, 16  ;;  %v1973_v43 = vld [vmem:[%s2381_s29 + $0x3c] sm:$0x1] }
  0x43   : > { %2127 = vmatprep.mubr.msk.bf16.mxu1 %vm230_vm0, %v2305_v35  ;;  %v1480_v28 = vrot.slane %v1479_v20, 4  ;;  %v1518_v35 = vshll.u32 %v1970_v22, 16  ;;  %v1524_v41 = vshll.u32 %v1971_v24, 16  ;;  %v1974_v45 = vld [vmem:[%s2381_s29 + $0x40] sm:$0xf]  ;;  %v1529_v47 = vshrl.u32 %v1972_v36, 16 }
  0x44   : > { %v1494_v32 = vrot.slane %v1493_v8, 4  ;;  %v1506_v34 = vrot.slane %v1504_v26, 5  ;;  %v1512_v38 = vrot.slane %v1510_v30, 5  ;;  %v1532_v50 = vshll.u32 %v1972_v36, 16  ;;  %v2313_v7 = vld [vmem:[%s2381_s29 + $0x108] ss:$8 sps:$4 sm:$0xff]  }
  0x45   : > { %v1526_v49 = vrot.slane %v1524_v41, 5  ;;  %v1538_v51 = vshll.u32 %v1973_v43, 16  ;;  %v1546_v56 = vshll.u32 %v1974_v45, 16 }
  0x46   : > { %v1534_v55 = vrot.slane %v1532_v50, 5 }
  0x47   : > { %2176 = vmatmul.mubr.msk.bf16.vlgmr.msra.gmra.mrb[0].mxu0 %vm230_vm0, %v2303_v29  ;;  %v2312_v29 = vld [vmem:[%s2381_s29 + $0xf8] ss:$8 sps:$4 sm:$0xff]   ;;  %v1548_v63 = vrot.slane %v1546_v56, 5 }
  0x48   : > { %2184 = vmatpush3.bf16.msra.mxu0 %v2304_v42  ;;  %2179 = vmatprep.mubr.msk.bf16.mxu0 %vm230_vm0, %v2307_v37  ;;  %v1447_v42 = vrot.slane %v1445_v46, 4  ;;  %v1485_v37 = vsel %vm2421_vm3, %v1480_v28, %v1484_v12  ;;  %v1975_v46 = vld [vmem:[%s2381_s29 + $0x44] sm:$0x1] }
  0x49   : > { %2185 = vmatprep.subr.bf16.mxu0 %v2309_v33 }
  0x4a   : > { %v1451_v62 = vor.u32 %v1450_v54, %v1447_v42  ;;  %2128 = vmatmul.mubr.msk.bf16.vlgmr.msra.gmra.mrb[0].mxu1 %vm230_vm0, %v2306_v23  ;;  %v1499_v23 = vsel %vm2421_vm3, %v1494_v32, %v1498_v16  ;;  %v1531_v42 = vrot.slane %v1529_v47, 4  ;;  %v1543_v54 = vshrl.u32 %v1974_v45, 16 }
  0x4b   : > { %2197 = vmatpush3.bf16.msra.mxu1 %v2356_v1  ;;  %2131 = vmatprep.mubr.msk.bf16.mxu1 %vm230_vm0, %v2310_v48  ;;  %v1471_v1 = vsel %vm2421_vm3, %v1466_v13, %v1470_v60  ;;  %v1981_v48 = vcombine.low %v1485_v37, %v1499_v23 }
  0x4c   : > { %2186 = vmatpush3.bf16.msra.mxu0 %v2309_v33  ;;  %v1452_v9 = vrot.slane %v1451_v62, 4  ;;  %2196 = vmatprep.subr.bf16.mxu1 %v2367_v3  ;;  %v1503_v33 = vrot.slane %v1501_v25, 4  ;;  %v1545_v60 = vrot.slane %v1543_v54, 4  ;;  %v1535_v61 = vor.u32 %v1534_v55, %v1531_v42 }
  0x4d   : > { %v1540_v62 = vrot.slane %v1538_v51, 5 }
  0x4e   : > { %v1457_v19 = vsel %vm2421_vm3, %v1452_v9, %v1456_v57  ;;  %v1507_v44 = vor.u32 %v1506_v34, %v1503_v33  ;;  %v1552_v57 = vshll.u32 %v1975_v46, 16  ;;  %v1536_v4 = vrot.slane %v1535_v61, 4 }
  0x4f   : > { %2180 = vmatmul.mubr.msk.bf16.gmra.mrb[4].mxu0 %vm230_vm0, %v2308_v40  ;;  %v1980_v27 = vcombine.low %v1457_v19, %v1471_v1  ;;  %2198 = vmatpush3.bf16.msra.mxu1 %v2367_v3  ;;  %v1517_v40 = vrot.slane %v1515_v31, 4  ;;  %v1520_v3 = vrot.slane %v1518_v35, 5  ;;  %v1549_v5 = vor.u32 %v1548_v63, %v1545_v60 }
  0x50   : > { %v1508_v52 = vrot.slane %v1507_v44, 4  ;;  %v1554_v6 = vrot.slane %v1552_v57, 5  ;;  %v1541_v9 = vsel %vm2421_vm3, %v1536_v4, %v1540_v62 }
  0x51   : > { %2187 = vmatprep.mubr.msk.bf16.mxu0 %vm230_vm0, %v1980_v27  ;;  %v1521_v53 = vor.u32 %v1520_v3, %v1517_v40  ;;  %v1550_v10 = vrot.slane %v1549_v5, 4 }
  0x52   : > { %2132 = vmatmul.mubr.msk.bf16.gmra.mrb[4].mxu1 %vm230_vm0, %v2311_v18  ;;  %v1513_v58 = vsel %vm2421_vm3, %v1508_v52, %v1512_v38  ;;  %v1990_v18 = vld [vmem:[%s2610_s2] ss:$0 sm:$0xff] }
  0x53   : > { %2143 = vmatprep.mubr.msk.bf16.mxu1 %vm230_vm0, %v2312_v29  ;;  %v1522_v59 = vrot.slane %v1521_v53, 4  ;;  %v1555_v11 = vsel %vm2421_vm3, %v1550_v10, %v1554_v6 }
  0x54   : > { %v1983_v12 = vcombine.low %v1541_v9, %v1555_v11 }
  0x55   : > { %v1527_v0 = vsel %vm2421_vm3, %v1522_v59, %v1526_v49 }
  0x56   : > { %v1982_v2 = vcombine.low %v1513_v58, %v1527_v0 }
  0x57   : > { %2188 = vmatmul.mubr.msk.bf16.vlgmr.msra.gmra.mrb[0].mxu0 %vm230_vm0, %v1981_v48 }
  0x58   : > { %2191 = vmatprep.mubr.msk.bf16.mxu0 %vm230_vm0, %v1982_v2 }
  0x5e   : > { %2144 = vmatmul.mubr.msk.bf16.vlgmr.msra.gmra.mrb[4].mxu1 %vm230_vm0, %v2313_v7 }
  0x5f   : > { %2192 = vmatmul.mubr.msk.bf16.gmra.mrb[4].mxu0 %vm230_vm0, %v1983_v12 }
 0x11d   : > { %v2129_v13 = vpop.f32.mrb[0].mxu1 }
 0x11e   : > { %v754_v14 = vpop.f32.mrb[1].mxu1 }
 0x11f   : > { %v2130_v15 = vpop.f32.mrb[2].mxu1 }
 0x120   : > { %v757_v16 = vpop.f32.mrb[3].mxu1 }
 0x12a   : > { %v2189_v17 = vpop.f32.mrb[0].mxu0 }
 0x12b   : > { %v2199_v19 = vadd.f32 %v2189_v17, %v2129_v13  ;;  %v1631_v20 = vpop.f32.mrb[1].mxu0 }
 0x12c   : > { %v2200_v21 = vadd.f32 %v1631_v20, %v754_v14  ;;  %v2190_v39 = vpop.f32.mrb[2].mxu0 }
 0x12d   : > { %v1679_v22 = vadd.f32 %v2199_v19, %v1990_v18  ;;  %v2201_v24 = vadd.f32 %v2190_v39, %v2130_v15  ;;  %v1634_v1 = vpop.f32.mrb[3].mxu0 }
 0x12e   : > { %v1677_v8 = vadd.f32 %v2200_v21, %v1990_v18  ;;  %v2202_v25 = vadd.f32 %v1634_v1, %v757_v16 }
 0x12f   : > { %v1680_v26 = vadd.f32 %v2201_v24, %v1990_v18  ;;  %v1687_v28 = vmax.f32 %v1679_v22, 0.0 }
 0x130   : > { %v1678_v27 = vadd.f32 %v2202_v25, %v1990_v18  ;;  %v1685_v30 = vmax.f32 %v1677_v8, 0.0 }
 0x131   : > { %v1688_v29 = vmax.f32 %v1680_v26, 0.0  ;;  %v2145_v34 = vpop.f32.mrb[4].mxu1 }
 0x132   : > { %v1686_v31 = vmax.f32 %v1678_v27, 0.0  ;;  %v2193_v35 = vpop.f32.mrb[4].mxu0  ;;  %v901_v36 = vpop.f32.mrb[5].mxu1 }
 0x133   : > { %v2018_v32 = vpack.c.bf16 %v1688_v29, %v1687_v28  ;;  %v2203_v37 = vadd.f32 %v2193_v35, %v2145_v34  ;;  %v1647_v38 = vpop.f32.mrb[5].mxu0  ;;  %v2146_v40 = vpop.f32.mrb[6].mxu1 }
 0x134   : > { %v2013_v33 = vpack.c.bf16 %v1686_v31, %v1685_v30  ;;  %v2204_v41 = vadd.f32 %v1647_v38, %v901_v36  ;;  %v2194_v43 = vpop.f32.mrb[6].mxu0  ;;  %v904_v23 = vpop.f32.mrb[7].mxu1 }
 0x135   : > { %2030 = vst [vmem:[%s170_s7 + $0x8] sm:$0xff] %v2018_v32   ;;  %v1683_v44 = vadd.f32 %v2203_v37, %v1990_v18  ;;  %v2205_v3 = vadd.f32 %v2194_v43, %v2146_v40  ;;  %v1650_v45 = vpop.f32.mrb[7].mxu0 }
 0x136   : > { %2014 = vst [vmem:[%s170_s7] sm:$0xff] %v2013_v33   ;;  %v1681_v46 = vadd.f32 %v2204_v41, %v1990_v18  ;;  %v2206_v47 = vadd.f32 %v1650_v45, %v904_v23 }
 0x137   : > { %v1684_v48 = vadd.f32 %v2205_v3, %v1990_v18  ;;  %v1691_v50 = vmax.f32 %v1683_v44, 0.0 }
 0x138   : > { %v1682_v49 = vadd.f32 %v2206_v47, %v1990_v18  ;;  %v1689_v52 = vmax.f32 %v1681_v46, 0.0 }
 0x139   : > { %v1692_v51 = vmax.f32 %v1684_v48, 0.0 }
 0x13a   : > { %v1690_v53 = vmax.f32 %v1682_v49, 0.0 }
 0x13b   : > { %v2028_v42 = vpack.c.bf16 %v1692_v51, %v1691_v50 }
 0x13c   : > { %v2023_v54 = vpack.c.bf16 %v1690_v53, %v1689_v52 }
 0x13d   : > { %2032 = vst [vmem:[%s170_s7 + $0x18] sm:$0xff] %v2028_v42  }
 0x13e   : > { %2031 = vst [vmem:[%s170_s7 + $0x10] sm:$0xff] %v2023_v54  }
 0x13f PF: > { %s13_s12 = sadd.s32 1, %s2320_s12  }
 0x140   : > { %p10_p4 = scmp.ge.s32.totalorder %s13_s12, 4  }
 0x142   :  { %12 = sbr.rel (!%p10_p4) target bundleno = 1 (0x1), region = 75 }

// kernel: basic_block_forward.3
= control target key start
LH: loop header
LB: loop body
LE: loop exit
PB: predicated region body
PF: predicated region fallthrough
CT: control target
= control target key end

     0   :  { %s3400_s21 = smov 0   ;;  %s4052_s0 = inlined_call_operand.vmem [shape: bf16[2,10,10,128], index: 0, kind: input, shape index: {}]   ;;  %s4053_s1 = inlined_call_operand.vmem [shape: bf16[9,128,128], index: 1, kind: input, shape index: {}]   ;;  %s4054_s2 = inlined_call_operand.vmem [shape: f32[1,128], index: 2, kind: input, shape index: {}]   ;;  %s4055_s3 = inlined_call_operand.vmem [shape: bf16[2,64,32], index: 3, kind: input, shape index: {}]   ;;  %s4056_s4 = inlined_call_operand.vmem [shape: bf16[32,128], index: 4, kind: input, shape index: {}]   ;;  %s4057_s5 = inlined_call_operand.vmem [shape: f32[1,128], index: 5, kind: input, shape index: {}]   ;;  %s4058_s6 = inlined_call_operand.vmem [shape: f32[2,64,128], index: 6, kind: output, shape index: {}]  }
   0x1 LB: > { %s2485_s22 = sadd.s32 4294967295, %s3363_s21   ;;  %p2489_p0 = scmp.ge.s32.totalorder %s3363_s21, 1  ;;  %s3363_s21 = sphi %s3400_s21, %s16_s21  }
   0x2   : > { %p222_p1 = scmp.lt.s32.totalorder %s3363_s21, 3 }
   0x4   : > { %p223_p2 = pnand %p2489_p0, %p222_p1 }
   0x5   : > { %v3266_v0 = vld [vmem:[%s4053_s1 + $0x40] sm:$0xff] (!%p223_p2)   ;;  %p257_p3 = scmp.lt.s32.totalorder (!%p223_p2), %s2485_s22, 1  ;;  %v3268_v2 = vld [vmem:[%s4053_s1 + $0x48] sm:$0xff] (!%p223_p2)   ;;  %v3270_v4 = vld [vmem:[%s4053_s1 + $0x50] sm:$0xff] (!%p223_p2)   ;;  %vm727_vm0 = vcmask (!%p223_p2), 1042432   ;;  %vm728_vm1 = vcmask (!%p223_p2), 1046532  }
   0x6   : > { %226 = sbr.rel (%p223_p2) target bundleno = 398 (0x18e), region = 44  ;;  %v3267_v1 = vld [vmem:[%s4053_s1 + $0x140] sm:$0xff] (!%p223_p2)   ;;  %2949 = vmatprep.subr.bf16.mxu1 (!%p223_p2), %v3266_v0  ;;  %v3269_v3 = vld [vmem:[%s4053_s1 + $0x148] sm:$0xff] (!%p223_p2)   ;;  %v3271_v5 = vld [vmem:[%s4053_s1 + $0x150] sm:$0xff] (!%p223_p2)   ;;  %vm305_vm2 = vsmask.f32 (!%p223_p2), 3328 }
   0x7   : > { %3069 = vmatprep.subr.bf16.mxu0 (!%p223_p2), %v3267_v1  ;;  %2950 = vmatpush3.bf16.msra.mxu1 (!%p223_p2), %v3266_v0  ;;  %v3272_v6 = vld [vmem:[%s4053_s1 + $0x58] sm:$0xff] (!%p223_p2)   ;;  %v3274_v8 = vld [vmem:[%s4053_s1 + $0x60] sm:$0xff] (!%p223_p2)   ;;  %v3276_v10 = vld [vmem:[%s4053_s1 + $0x68] sm:$0xff] (!%p223_p2)   ;;  %vm306_vm3 = vsmask.f32 (!%p223_p2), 7440  ;;  %vm2301_vm6 = vcmask (!%p223_p2), 261120  }
   0x8   : > { %3070 = vmatpush3.bf16.msra.mxu0 (!%p223_p2), %v3267_v1  ;;  %2951 = vmatprep.subr.bf16.mxu1 (!%p223_p2), %v3268_v2  ;;  %v3273_v7 = vld [vmem:[%s4053_s1 + $0x158] sm:$0xff] (!%p223_p2)   ;;  %v3275_v9 = vld [vmem:[%s4053_s1 + $0x160] sm:$0xff] (!%p223_p2)   ;;  %v3277_v14 = vld [vmem:[%s4053_s1 + $0x168] sm:$0xff] (!%p223_p2)  }
   0x9   : > { %3071 = vmatprep.subr.bf16.mxu0 (!%p223_p2), %v3269_v3  ;;  %v3278_v22 = vld [vmem:[%s4053_s1 + $0x70] sm:$0xff] (!%p223_p2)   ;;  %vm3484_vm4 = vmor (!%p223_p2), %vm727_vm0, %vm728_vm1  ;;  %v3280_v41 = vld [vmem:[%s4053_s1 + $0x78] sm:$0xff] (!%p223_p2)  }
   0xa   : > { %v3279_v26 = vld [vmem:[%s4053_s1 + $0x170] sm:$0xff] (!%p223_p2)   ;;  %vm3492_vm5 = vmor (!%p223_p2), %vm305_vm2, %vm306_vm3  ;;  %v3281_v44 = vld [vmem:[%s4053_s1 + $0x178] sm:$0xff] (!%p223_p2)  }
   0xb   : > { %2952 = vmatpush3.bf16.msra.mxu1 (!%p223_p2), %v3268_v2  ;;  %v3282_v61 = vld [vmem:[%s4053_s1] sm:$0xff] (!%p223_p2)  }
   0xc   : > { %3072 = vmatpush3.bf16.msra.mxu0 (!%p223_p2), %v3269_v3  ;;  %2953 = vmatprep.subr.bf16.mxu1 (!%p223_p2), %v3270_v4  ;;  %v3283_v2 = vld [vmem:[%s4053_s1 + $0x180] sm:$0xff] (!%p223_p2)  }
   0xd   : > { %s4064_s22 = smov (!%p257_p3, %s2485_s22), 1  ;;  %3073 = vmatprep.subr.bf16.mxu0 %v3271_v5 }
   0xe   : > { %s3257_s15 = smul.u32 80, %s4064_s22  ;;  %s2833_s13 = sshll.u32 %s4064_s22, 5 }
   0xf   : > { %2954 = vmatpush3.bf16.msra.mxu1 %v3270_v4  ;;  %s3909_s25 = scalar_lea.vmem %s4055_s3, %s2833_s13  ;;  %s2834_s10 = sshll.u32 %s4064_s22, 6 }
  0x10   : > { %3074 = vmatpush3.bf16.msra.mxu0 %v3271_v5  ;;  %2955 = vmatprep.subr.bf16.mxu1 %v3272_v6  ;;  %s3444_s24 = scalar_lea.vmem %s4052_s0, %s3257_s15  ;;  %s4039_s13 = scalar_lea.vmem %s4058_s6, %s2834_s10 }
  0x11   : > { %3075 = vmatprep.subr.bf16.mxu0 %v3273_v7  ;;  %v3450_v11 = vld [vmem:[%s3444_s24] sm:$0xf]  ;;  %v3453_v12 = vld [vmem:[%s3444_s24 + $0x8] sm:$0xf]  ;;  %v3456_v13 = vld [vmem:[%s3444_s24 + $0x4] sm:$0x1] }
  0x12   : > { %v3462_v15 = vld [vmem:[%s3444_s24 + $0xc] sm:$0x1]  ;;  %v309_v16 = vshrl.u32 %v3450_v11, 16  ;;  %v312_v17 = vshll.u32 %v3450_v11, 16  ;;  %v318_v18 = vshll.u32 %v3456_v13, 16  ;;  %v323_v19 = vshrl.u32 %v3453_v12, 16 }
  0x13   : > { %2956 = vmatpush3.bf16.msra.mxu1 %v3272_v6  ;;  %v326_v20 = vshll.u32 %v3453_v12, 16  ;;  %v332_v21 = vshll.u32 %v3462_v15, 16  ;;  %v3477_v28 = vld [vmem:[%s3444_s24 + $0xc] sm:$0x1]  ;;  %v3480_v29 = vld [vmem:[%s3444_s24 + $0x14] sm:$0x1] }
  0x14   : > { %3076 = vmatpush3.bf16.msra.mxu0 %v3273_v7  ;;  %2957 = vmatprep.subr.bf16.mxu1 %v3274_v8  ;;  %v311_v23 = vrot.slane %v309_v16, 4  ;;  %v314_v24 = vrot.slane %v312_v17, 5  ;;  %v325_v25 = vrot.slane %v323_v19, 4  ;;  %v320_v31 = vrot.slane %v318_v18, 5  ;;  %v2651_v34 = vld [vmem:[%s3444_s24 + $0x8] sm:$0xe] }
  0x15   : > { %3077 = vmatprep.subr.bf16.mxu0 %v3275_v9  ;;  %v328_v27 = vrot.slane %v326_v20, 5  ;;  %v334_v32 = vrot.slane %v332_v21, 5  ;;  %v2652_v35 = vld [vmem:[%s3444_s24 + $0x10] sm:$0xe]  ;;  %v2659_v38 = vrot.slane %v2651_v34, 9  ;;  %v1395_v39 = vrot.slane %v3477_v28, 5 }
  0x16   : > { %v315_v30 = vor.u32 %v314_v24, %v311_v23  ;;  %v2660_v40 = vrot.slane %v2652_v35, 9  ;;  %v1399_v43 = vrot.slane %v3480_v29, 5  ;;  %v3507_v47 = vld [vmem:[%s3444_s24 + $0x10] sm:$0xf]  ;;  %v3510_v48 = vld [vmem:[%s3444_s24 + $0x18] sm:$0xf] }
  0x17   : > { %2958 = vmatpush3.bf16.msra.mxu1 %v3274_v8  ;;  %v329_v37 = vor.u32 %v328_v27, %v325_v25  ;;  %v1396_v46 = vsel %vm3484_vm4, %v2659_v38, %v1395_v39  ;;  %v3517_v51 = vld [vmem:[%s3444_s24 + $0x14] sm:$0x1]  ;;  %v3520_v52 = vld [vmem:[%s3444_s24 + $0x1c] sm:$0x1]  ;;  %v337_v53 = vshrl.u32 %v3507_v47, 16  ;;  %v340_v54 = vshll.u32 %v3507_v47, 16 }
  0x18   : > { %3078 = vmatpush3.bf16.msra.mxu0 %v3275_v9  ;;  %2959 = vmatprep.subr.bf16.mxu1 %v3276_v10  ;;  %v316_v42 = vrot.slane %v315_v30, 4  ;;  %v1400_v50 = vsel %vm3484_vm4, %v2660_v40, %v1399_v43  ;;  %v346_v57 = vshll.u32 %v3517_v51, 16  ;;  %v351_v58 = vshrl.u32 %v3510_v48, 16  ;;  %v3529_v59 = vld [vmem:[%s3444_s24 + $0x1c] sm:$0x1]  ;;  %v3285_v24 = vld [vmem:[%s4053_s1 + $0x188] sm:$0xff]  }
  0x19   : > { %3079 = vmatprep.subr.bf16.mxu0 %v3277_v14  ;;  %v330_v45 = vrot.slane %v329_v37, 4  ;;  %v2683_v56 = vcombine.low %v1396_v46, %v1400_v50  ;;  %v339_v62 = vrot.slane %v337_v53, 4  ;;  %v342_v63 = vrot.slane %v340_v54, 5  ;;  %v2653_v1 = vld [vmem:[%s3444_s24 + $0x18] sm:$0xe]  ;;  %v3287_v34 = vld [vmem:[%s4053_s1 + $0x190] sm:$0xff]  }
  0x1a   : > { %v321_v49 = vsel %vm3492_vm5, %v316_v42, %v320_v31  ;;  %v354_v0 = vshll.u32 %v3510_v48, 16  ;;  %v353_v3 = vrot.slane %v351_v58, 4  ;;  %v360_v4 = vshll.u32 %v3520_v52, 16  ;;  %v2654_v5 = vld [vmem:[%s3444_s24 + $0x20] sm:$0xe]  ;;  %v3284_v31 = vld [vmem:[%s4053_s1 + $0x8] sm:$0xff]  }
  0x1b   : > { %2960 = vmatpush3.bf16.msra.mxu1 %v3276_v10  ;;  %v335_v55 = vsel %vm3492_vm5, %v330_v45, %v334_v32  ;;  %3085 = vmatprep.mubr.bf16.mxu0 %v2683_v56  ;;  %v343_v6 = vor.u32 %v342_v63, %v339_v62  ;;  %v348_v7 = vrot.slane %v346_v57, 5  ;;  %v3542_v9 = vld [vmem:[%s3444_s24 + $0x24] sm:$0x1]  ;;  %v2661_v10 = vrot.slane %v2653_v1, 9  ;;  %v3286_v32 = vld [vmem:[%s4053_s1 + $0x10] sm:$0xff]  }
  0x1c   : > { %3080 = vmatpush3.bf16.msra.mxu0 %v3277_v14  ;;  %2961 = vmatprep.subr.bf16.mxu1 %v3278_v22  ;;  %v2511_v60 = vcombine.low %v321_v49, %v335_v55  ;;  %v356_v8 = vrot.slane %v354_v0, 5  ;;  %v1403_v14 = vrot.slane %v3529_v59, 5  ;;  %v362_v18 = vrot.slane %v360_v4, 5  ;;  %v3567_v35 = vld [vmem:[%s3444_s24 + $0x20] sm:$0xf]  ;;  %v3289_v49 = vld [vmem:[%s4053_s1 + $0x198] sm:$0xff]  }
  0x1d   : > { %3081 = vmatprep.subr.bf16.mxu0 %v3279_v26  ;;  %v344_v16 = vrot.slane %v343_v6, 4  ;;  %v2662_v19 = vrot.slane %v2654_v5, 9  ;;  %v1407_v21 = vrot.slane %v3542_v9, 5  ;;  %v3570_v37 = vld [vmem:[%s3444_s24 + $0x28] sm:$0xf]  ;;  %v365_v40 = vshrl.u32 %v3567_v35, 16 }
  0x1e   : > { %2965 = vmatprep.mubr.bf16.mxu1 %v2511_v60  ;;  %v357_v17 = vor.u32 %v356_v8, %v353_v3  ;;  %v1404_v20 = vsel %vm3484_vm4, %v2661_v10, %v1403_v14  ;;  %v3573_v38 = vld [vmem:[%s3444_s24 + $0x24] sm:$0x1]  ;;  %v3576_v39 = vld [vmem:[%s3444_s24 + $0x2c] sm:$0x1]  ;;  %v379_v43 = vshrl.u32 %v3570_v37, 16  ;;  %v382_v45 = vshll.u32 %v3570_v37, 16 }
  0x1f   : > { %2962 = vmatpush3.bf16.msra.mxu1 %v3278_v22  ;;  %v349_v22 = vsel %vm3492_vm5, %v344_v16, %v348_v7  ;;  %v1408_v25 = vsel %vm3484_vm4, %v2662_v19, %v1407_v21  ;;  %v374_v42 = vshll.u32 %v3573_v38, 16  ;;  %v388_v46 = vshll.u32 %v3576_v39, 16  ;;  %v3591_v55 = vld [vmem:[%s3444_s24 + $0x2c] sm:$0x1]  ;;  %v3594_v58 = vld [vmem:[%s3444_s24 + $0x34] sm:$0x1] }
  0x20   : > { %3082 = vmatpush3.bf16.msra.mxu0 %v3279_v26  ;;  %2963 = vmatprep.subr.bf16.mxu1 %v3280_v41  ;;  %v358_v23 = vrot.slane %v357_v17, 4  ;;  %v2684_v27 = vcombine.low %v1404_v20, %v1408_v25  ;;  %v367_v50 = vrot.slane %v365_v40, 4  ;;  %v381_v54 = vrot.slane %v379_v43, 4  ;;  %v2655_v60 = vld [vmem:[%s3444_s24 + $0x28] sm:$0xe]  ;;  %v3291_v6 = vld [vmem:[%s4053_s1 + $0x1a0] sm:$0xff]  }
  0x21   : > { %3083 = vmatprep.subr.bf16.mxu0 %v3281_v44  ;;  %v376_v56 = vrot.slane %v374_v42, 5  ;;  %v384_v57 = vrot.slane %v382_v45, 5  ;;  %v2656_v62 = vld [vmem:[%s3444_s24 + $0x30] sm:$0xe]  ;;  %v2663_v63 = vrot.slane %v2655_v60, 9  ;;  %v1411_v0 = vrot.slane %v3591_v55, 5 }
  0x22   : > { %v363_v26 = vsel %vm3492_vm5, %v358_v23, %v362_v18  ;;  %v1415_v1 = vrot.slane %v3594_v58, 5  ;;  %v390_v4 = vrot.slane %v388_v46, 5  ;;  %v2664_v5 = vrot.slane %v2656_v62, 9  ;;  %v3609_v10 = vld [vmem:[%s3444_s24 + $0x30] sm:$0xf] }
  0x23   : > { %2964 = vmatpush3.bf16.msra.mxu1 %v3280_v41  ;;  %v2512_v30 = vcombine.low %v349_v22, %v363_v26  ;;  %v368_v41 = vshll.u32 %v3567_v35, 16  ;;  %v385_v3 = vor.u32 %v384_v57, %v381_v54  ;;  %v1412_v8 = vsel %vm3484_vm4, %v2663_v63, %v1411_v0  ;;  %v3612_v14 = vld [vmem:[%s3444_s24 + $0x38] sm:$0xf]  ;;  %v3617_v18 = vld [vmem:[%s3444_s24 + $0x34] sm:$0x1] }
  0x24   : > { %3084 = vmatpush3.bf16.msra.mxu0 %v3281_v44  ;;  %2973 = vmatprep.subr.bf16.mxu1 %v3282_v61  ;;  %v3288_v44 = vld [vmem:[%s4053_s1 + $0x18] sm:$0xff]   ;;  %v1416_v17 = vsel %vm3484_vm4, %v2664_v5, %v1415_v1  ;;  %v393_v20 = vshrl.u32 %v3609_v10, 16  ;;  %v396_v23 = vshll.u32 %v3609_v10, 16  ;;  %v2622_v26 = vld [vmem:[%s3444_s24 + $0x44] sm:$0x1]  ;;  %v3295_v0 = vld [vmem:[%s4053_s1 + $0x1b0] sm:$0xff]  }
  0x25   : > { %3093 = vmatprep.subr.bf16.mxu0 %v3283_v2  ;;  %v370_v53 = vrot.slane %v368_v41, 5  ;;  %v386_v16 = vrot.slane %v385_v3, 4  ;;  %v3620_v19 = vld [vmem:[%s3444_s24 + $0x3c] sm:$0x1]  ;;  %v2685_v22 = vcombine.low %v1412_v8, %v1416_v17  ;;  %v2657_v40 = vld [vmem:[%s3444_s24 + $0x38] sm:$0xe] }
  0x26   : > { %2966 = vmatmul.mubr.bf16.vlgmr.msra.gmra.mrb[0].mxu1 %v2512_v30  ;;  %v3628_v25 = vld [vmem:[%s3444_s24 + $0x3c] sm:$0x1]  ;;  %v3293_v41 = vld [vmem:[%s4053_s1 + $0x1a8] sm:$0xff]   ;;  %v398_v43 = vrot.slane %v396_v23, 5  ;;  %v416_v46 = vshll.u32 %v3620_v19, 16  ;;  %v2665_v54 = vrot.slane %v2657_v40, 9  ;;  %v2524_v23 = vcombine.low %v3507_v47, %v3510_v48 }
  0x27   : > { %3086 = vmatmul.mubr.bf16.vlgmr.msra.gmra.mrb[0].mxu0 %v2684_v27  ;;  %2974 = vmatpush3.bf16.msra.mxu1 %v3282_v61  ;;  %v371_v61 = vor.u32 %v370_v53, %v367_v50  ;;  %v3292_v27 = vld [vmem:[%s4053_s1 + $0x28] sm:$0xff]   ;;  %v391_v30 = vsel %vm3492_vm5, %v386_v16, %v390_v4  ;;  %v3294_v4 = vld [vmem:[%s4053_s1 + $0x30] sm:$0xff]   ;;  %v3296_v16 = vld [vmem:[%s4053_s1 + $0x38] sm:$0xff]   ;;  %v1113_v47 = vshll.u32 %v3477_v28, 16  ;;  %v1127_v48 = vshll.u32 %v3480_v29, 16 }
  0x28   : > { %3094 = vmatpush3.bf16.msra.mxu0 %v3283_v2  ;;  %2975 = vmatprep.subr.bf16.mxu1 %v3284_v31  ;;  %v3290_v2 = vld [vmem:[%s4053_s1 + $0x20] sm:$0xff]   ;;  %v418_v57 = vrot.slane %v416_v46, 5  ;;  %v3297_v17 = vld [vmem:[%s4053_s1 + $0x1b8] sm:$0xff]  }
  0x29   : > { %3095 = vmatprep.subr.bf16.mxu0 %v3285_v24  ;;  %v372_v7 = vrot.slane %v371_v61, 4  ;;  %3089 = vmatprep.mubr.bf16.mxu0 %v2685_v22  ;;  %v1423_v61 = vrot.slane %v2622_v26, 5  ;;  %v3301_v22 = vld [vmem:[%s4053_s1 + $0x1c0] sm:$0xff]   ;;  %v3305_v26 = vld [vmem:[%s4053_s1 + $0x1c8] sm:$0xff]   ;;  %v2611_v33 = vld [vmem:[%s3444_s24 + $0x18] sm:$0xf] }
  0x2a   : > { %v703_v40 = vld [vmem:[%s3444_s24] sm:$0xe] }
  0x2b   : > { %2976 = vmatpush3.bf16.msra.mxu1 %v3284_v31  ;;  %v377_v21 = vsel %vm3492_vm5, %v372_v7, %v376_v56  ;;  %v395_v31 = vrot.slane %v393_v20, 4  ;;  %v1419_v56 = vrot.slane %v3628_v25, 5  ;;  %v3300_v7 = vld [vmem:[%s3444_s24 + $0x10] ss:$8 sps:$4 sm:$0xff]   ;;  %v2523_v20 = vcombine.low %v3450_v11, %v3453_v12  ;;  %v3299_v11 = vld [vmem:[%s4053_s1 + $0x80] sm:$0xff]  }
  0x2c   : > { %3096 = vmatpush3.bf16.msra.mxu0 %v3285_v24  ;;  %2977 = vmatprep.subr.bf16.mxu1 %v3286_v32  ;;  %v402_v24 = vshll.u32 %v3617_v18, 16  ;;  %v2513_v42 = vcombine.low %v377_v21, %v391_v30  ;;  %v3303_v12 = vld [vmem:[%s3444_s24 + $0x20] ss:$8 sps:$4 sm:$0xff]  }
  0x2d   : > { %3097 = vmatprep.subr.bf16.mxu0 %v3287_v34  ;;  %v1420_v63 = vsel %vm3484_vm4, %v2665_v54, %v1419_v56  ;;  %v3304_v30 = vld [vmem:[%s4053_s1 + $0x88] sm:$0xff]   ;;  %v748_v54 = vrot.slane %v3573_v38, 5  ;;  %v3331_v28 = vld [vmem:[%s4053_s1 + $0x220] sm:$0xff]  }
  0x2e   : > { %v404_v45 = vrot.slane %v402_v24, 5  ;;  %2969 = vmatprep.mubr.bf16.mxu1 %v2513_v42  ;;  %v732_v24 = vrot.slane %v3456_v13, 5  ;;  %v3316_v13 = vld [vmem:[%s3444_s24 + $0x30] ss:$8 sps:$4 sm:$0xff]   ;;  %v2777_v29 = vld [vmem:[%s3444_s24 + $0x20] sm:$0xe] }
  0x2f   : > { %2978 = vmatpush3.bf16.msra.mxu1 %v3286_v32  ;;  %v407_v32 = vshrl.u32 %v3612_v14, 16  ;;  %v3308_v42 = vld [vmem:[%s4053_s1 + $0x98] sm:$0xff]  }
  0x30   : > { %3098 = vmatpush3.bf16.msra.mxu0 %v3287_v34  ;;  %2979 = vmatprep.subr.bf16.mxu1 %v3288_v44  ;;  %v410_v34 = vshll.u32 %v3612_v14, 16 }
  0x31   : > { %3099 = vmatprep.subr.bf16.mxu0 %v3289_v49  ;;  %v409_v50 = vrot.slane %v407_v32, 4  ;;  %v3307_v32 = vld [vmem:[%s4053_s1 + $0x1d0] sm:$0xff]  }
  0x32   : > { %v412_v53 = vrot.slane %v410_v34, 5  ;;  %v3319_v34 = vld [vmem:[%s3444_s24 + $0x40] ss:$8 sps:$4 sm:$0xff]  }
  0x33   : > { %2980 = vmatpush3.bf16.msra.mxu1 %v3288_v44  ;;  %v399_v44 = vor.u32 %v398_v43, %v395_v31  ;;  %v2525_v31 = vcombine.low %v3567_v35, %v3570_v37  ;;  %v744_v35 = vrot.slane %v3520_v52, 5  ;;  %v3306_v37 = vld [vmem:[%s4053_s1 + $0x90] sm:$0xff]   ;;  %v2526_v43 = vcombine.low %v3609_v10, %v3612_v14  ;;  %v2733_v14 = vld [vmem:[%s3444_s24 + $0x18] sm:$0xf] }
  0x34   : > { %3100 = vmatpush3.bf16.msra.mxu0 %v3289_v49  ;;  %v2658_v49 = vld [vmem:[%s3444_s24 + $0x40] sm:$0xe]  ;;  %2981 = vmatprep.subr.bf16.mxu1 %v3290_v2  ;;  %v413_v62 = vor.u32 %v412_v53, %v409_v50  ;;  %v2731_v50 = vld [vmem:[%s3444_s24 + $0x10] sm:$0xf]  ;;  %v3711_v53 = vld [vmem:[%s3444_s24 + $0x14] sm:$0x1] }
  0x35   : > { %3101 = vmatprep.subr.bf16.mxu0 %v3291_v6  ;;  %v2666_v60 = vrot.slane %v2658_v49, 9  ;;  %v400_v1 = vrot.slane %v399_v44, 4  ;;  %v3309_v49 = vld [vmem:[%s4053_s1 + $0x1d8] sm:$0xff]  }
  0x36   : > { %v414_v5 = vrot.slane %v413_v62, 4  ;;  %v3720_v44 = vld [vmem:[%s3444_s24 + $0x1c] sm:$0x1]  ;;  %v1776_v62 = vshll.u32 %v3711_v53, 16 }
  0x37   : > { %2982 = vmatpush3.bf16.msra.mxu1 %v3290_v2  ;;  %v1424_v3 = vsel %vm3484_vm4, %v2666_v60, %v1423_v61  ;;  %v405_v2 = vsel %vm3492_vm5, %v400_v1, %v404_v45  ;;  %v2535_v45 = vrot.slane %v703_v40, 9  ;;  %v1770_v60 = vshll.u32 %v2731_v50, 16  ;;  %v3310_v1 = vld [vmem:[%s4053_s1 + $0xa0] sm:$0xff]   ;;  %v3313_v40 = vld [vmem:[%s4053_s1 + $0x1e8] sm:$0xff]  }
  0x38   : > { %3102 = vmatpush3.bf16.msra.mxu0 %v3291_v6  ;;  %2983 = vmatprep.subr.bf16.mxu1 %v3292_v27  ;;  %v2686_v6 = vcombine.low %v1420_v63, %v1424_v3  ;;  %v419_v8 = vsel %vm3492_vm5, %v414_v5, %v418_v57  ;;  %v1767_v57 = vshrl.u32 %v2731_v50, 16  ;;  %v1781_v63 = vshrl.u32 %v2733_v14, 16 }
  0x39   : > { %3103 = vmatprep.subr.bf16.mxu0 %v3293_v41  ;;  %v2514_v21 = vcombine.low %v405_v2, %v419_v8  ;;  %v733_v56 = vsel %vm3484_vm4, %v2535_v45, %v732_v24  ;;  %v1790_v5 = vshll.u32 %v3720_v44, 16  ;;  %v3734_v24 = vld [vmem:[%s3444_s24 + $0x24] sm:$0x1] }
  0x3a   : > { %3090 = vmatmul.mubr.bf16.gmra.mrb[4].mxu0 %v2686_v6  ;;  %v1769_v3 = vrot.slane %v1767_v57, 4  ;;  %v3311_v6 = vld [vmem:[%s4053_s1 + $0x1e0] sm:$0xff]   ;;  %v1783_v2 = vrot.slane %v1781_v63, 4  ;;  %v3317_v57 = vld [vmem:[%s4053_s1 + $0x1f0] sm:$0xff]  }
  0x3b   : > { %2984 = vmatpush3.bf16.msra.mxu1 %v3292_v27  ;;  %3109 = vmatprep.mubr.bf16.mxu0 %v3300_v7  ;;  %v736_v27 = vrot.slane %v3462_v15, 5  ;;  %v740_v15 = vrot.slane %v3517_v51, 5  ;;  %v1778_v7 = vrot.slane %v1776_v62, 5 }
  0x3c   : > { %3104 = vmatpush3.bf16.msra.mxu0 %v3293_v41  ;;  %2985 = vmatprep.subr.bf16.mxu1 %v3294_v4  ;;  %v704_v41 = vld [vmem:[%s3444_s24 + $0x8] sm:$0xe] }
  0x3d   : > { %3105 = vmatprep.subr.bf16.mxu0 %v3295_v0  ;;  %2970 = vmatmul.mubr.bf16.gmra.mrb[4].mxu1 %v2514_v21  ;;  %v2536_v46 = vrot.slane %v704_v41, 9  ;;  %v706_v21 = vld [vmem:[%s3444_s24 + $0x18] sm:$0xe] }
  0x3e   : > { %2989 = vmatprep.mubr.bf16.mxu1 %v2523_v20  ;;  %v1792_v20 = vrot.slane %v1790_v5, 5  ;;  %v3320_v5 = vld [vmem:[%s4053_s1 + $0xb8] sm:$0xff]  }
  0x3f   : > { %2986 = vmatpush3.bf16.msra.mxu1 %v3294_v4  ;;  %v737_v10 = vsel %vm3484_vm4, %v2536_v46, %v736_v27  ;;  %v1772_v4 = vrot.slane %v1770_v60, 5 }
  0x40   : > { %3106 = vmatpush3.bf16.msra.mxu0 %v3295_v0  ;;  %2987 = vmatprep.subr.bf16.mxu1 %v3296_v16  ;;  %v2559_v61 = vcombine.low %v733_v56, %v737_v10  ;;  %v1784_v0 = vshll.u32 %v2733_v14, 16 }
  0x41   : > { %3107 = vmatprep.subr.bf16.mxu0 %v3297_v17 }
  0x42   : > { %v1786_v8 = vrot.slane %v1784_v0, 5 }
  0x43   : > { %2988 = vmatpush3.bf16.msra.mxu1 %v3296_v16  ;;  %v705_v16 = vld [vmem:[%s3444_s24 + $0x10] sm:$0xe] }
  0x44   : > { %3108 = vmatpush3.bf16.msra.mxu0 %v3297_v17  ;;  %2997 = vmatprep.subr.bf16.mxu1 %v3299_v11  ;;  %v1773_v17 = vor.u32 %v1772_v4, %v1769_v3 }
  0x45   : > { %3117 = vmatprep.subr.bf16.mxu0 %v3301_v22 }
  0x46   : > { %2990 = vmatmul.mubr.bf16.vlgmr.msra.gmra.mrb[0].mxu1 %v2524_v23  ;;  %v2538_v23 = vrot.slane %v706_v21, 9 }
  0x47   : > { %3110 = vmatmul.mubr.bf16.vlgmr.msra.gmra.mrb[0].mxu0 %v3303_v12  ;;  %2998 = vmatpush3.bf16.msra.mxu1 %v3299_v11  ;;  %v2735_v11 = vld [vmem:[%s3444_s24 + $0x20] sm:$0xf]  ;;  %v1787_v12 = vor.u32 %v1786_v8, %v1783_v2  ;;  %v2739_v2 = vld [vmem:[%s3444_s24 + $0x30] sm:$0xf]  ;;  %v3785_v8 = vld [vmem:[%s3444_s24 + $0x34] sm:$0x1] }
  0x48   : > { %3118 = vmatpush3.bf16.msra.mxu0 %v3301_v22  ;;  %2999 = vmatprep.subr.bf16.mxu1 %v3304_v30  ;;  %v2537_v22 = vrot.slane %v705_v16, 9  ;;  %v1795_v27 = vshrl.u32 %v2735_v11, 16  ;;  %v3757_v51 = vsel %vm3484_vm4, %v2538_v23, %v744_v35  ;;  %v760_v16 = vrot.slane %v3620_v19, 5 }
  0x49   : > { %3119 = vmatprep.subr.bf16.mxu0 %v3305_v26  ;;  %2993 = vmatprep.mubr.bf16.mxu1 %v2525_v31  ;;  %v1774_v31 = vrot.slane %v1773_v17, 4  ;;  %v1788_v41 = vrot.slane %v1787_v12, 4  ;;  %v3322_v17 = vld [vmem:[%s4053_s1 + $0xc0] sm:$0xff]   ;;  %v1823_v12 = vshrl.u32 %v2739_v2, 16  ;;  %v1826_v23 = vshll.u32 %v2739_v2, 16 }
  0x4a   : > { %3113 = vmatprep.mubr.bf16.mxu0 %v3316_v13  ;;  %v3744_v13 = vsel %vm3484_vm4, %v2537_v22, %v740_v15  ;;  %v1797_v15 = vrot.slane %v1795_v27, 4  ;;  %v2741_v22 = vld [vmem:[%s3444_s24 + $0x38] sm:$0xf] }
  0x4b   : > { %3000 = vmatpush3.bf16.msra.mxu1 %v3304_v30  ;;  %v3312_v30 = vld [vmem:[%s4053_s1 + $0xa8] sm:$0xff]   ;;  %v1779_v45 = vsel %vm3492_vm5, %v1774_v31, %v1778_v7  ;;  %v1793_v50 = vsel %vm3492_vm5, %v1788_v41, %v1792_v20  ;;  %v3323_v7 = vld [vmem:[%s4053_s1 + $0x200] sm:$0xff]   ;;  %v1837_v27 = vshrl.u32 %v2741_v22, 16  ;;  %v1828_v41 = vrot.slane %v1826_v23, 5 }
  0x4c   : > { %3120 = vmatpush3.bf16.msra.mxu0 %v3305_v26  ;;  %3001 = vmatprep.subr.bf16.mxu1 %v3306_v37  ;;  %v2737_v26 = vld [vmem:[%s3444_s24 + $0x28] sm:$0xf]  ;;  %v2763_v10 = vcombine.low %v1779_v45, %v1793_v50  ;;  %v2058_v45 = vrot.slane %v3711_v53, 5  ;;  %v3877_v53 = vrot.slane %v1127_v48, 5  ;;  %v1169_v48 = vshll.u32 %v3591_v55, 16 }
  0x4d   : > { %3121 = vmatprep.subr.bf16.mxu0 %v3307_v32  ;;  %v1812_v56 = vshll.u32 %v2737_v26, 16  ;;  %v2785_v55 = vrot.slane %v2777_v29, 9  ;;  %v3345_v29 = vld [vmem:[%s4056_s4 + $0x8] sm:$0xff]  }
  0x4e   : > { %2994 = vmatmul.mubr.bf16.gmra.mrb[4].mxu1 %v2526_v43  ;;  %v1809_v43 = vshrl.u32 %v2737_v26, 16  ;;  %v1832_v26 = vshll.u32 %v3785_v8, 16 }
  0x4f   : > { %3114 = vmatmul.mubr.bf16.gmra.mrb[4].mxu0 %v3319_v34  ;;  %3002 = vmatpush3.bf16.msra.mxu1 %v3306_v37  ;;  %v1798_v37 = vshll.u32 %v2735_v11, 16  ;;  %v752_v34 = vrot.slane %v3576_v39, 5  ;;  %v1814_v60 = vrot.slane %v1812_v56, 5  ;;  %v3797_v11 = vld [vmem:[%s3444_s24 + $0x3c] sm:$0x1]  ;;  %v3326_v39 = vld [vmem:[%s4053_s1 + $0xd0] sm:$0xff]  }
  0x50   : > { %3122 = vmatpush3.bf16.msra.mxu0 %v3307_v32  ;;  %3003 = vmatprep.subr.bf16.mxu1 %v3308_v42  ;;  %v3747_v32 = vld [vmem:[%s3444_s24 + $0x2c] sm:$0x1]  ;;  %v1811_v52 = vrot.slane %v1809_v43, 4  ;;  %v1846_v31 = vshll.u32 %v3797_v11, 16  ;;  %v1834_v50 = vrot.slane %v1832_v26, 5 }
  0x51   : > { %3123 = vmatprep.subr.bf16.mxu0 %v3309_v49  ;;  %3013 = vmatprep.mubr.bf16.mxu1 %v2559_v61  ;;  %v1800_v46 = vrot.slane %v1798_v37, 5  ;;  %v1818_v35 = vshll.u32 %v3747_v32, 16  ;;  %v3315_v61 = vld [vmem:[%s4053_s1 + $0xb0] sm:$0xff]   ;;  %v707_v37 = vld [vmem:[%s3444_s24 + $0x20] sm:$0xe] }
  0x52   : > { %3133 = vmatprep.mubr.bf16.mxu0 %v2763_v10  ;;  %v1815_v63 = vor.u32 %v1814_v60, %v1811_v52  ;;  %v2539_v43 = vrot.slane %v707_v37, 9  ;;  %v1839_v52 = vrot.slane %v1837_v27, 4  ;;  %v1848_v10 = vrot.slane %v1846_v31, 5  ;;  %v2743_v60 = vld [vmem:[%s3444_s24 + $0x40] sm:$0xf] }
  0x53   : > { %3004 = vmatpush3.bf16.msra.mxu1 %v3308_v42  ;;  %v2560_v42 = vcombine.low %v3744_v13, %v3757_v51  ;;  %v1801_v14 = vor.u32 %v1800_v46, %v1797_v15  ;;  %v1820_v3 = vrot.slane %v1818_v35, 5  ;;  %v708_v15 = vld [vmem:[%s3444_s24 + $0x28] sm:$0xe]  ;;  %v709_v26 = vld [vmem:[%s3444_s24 + $0x30] sm:$0xe] }
  0x54   : > { %3124 = vmatpush3.bf16.msra.mxu0 %v3309_v49  ;;  %3005 = vmatprep.subr.bf16.mxu1 %v3310_v1  ;;  %v1804_v49 = vshll.u32 %v3734_v24, 16  ;;  %v1816_v4 = vrot.slane %v1815_v63, 4  ;;  %v2745_v63 = vld [vmem:[%s3444_s24 + $0x48] sm:$0xf]  ;;  %v3327_v13 = vld [vmem:[%s4053_s1 + $0x210] sm:$0xff]  }
  0x55   : > { %3125 = vmatprep.subr.bf16.mxu0 %v3311_v6  ;;  %v1802_v0 = vrot.slane %v1801_v14, 4  ;;  %v749_v14 = vsel %vm3484_vm4, %v2539_v43, %v748_v54  ;;  %v1851_v54 = vshrl.u32 %v2743_v60, 16  ;;  %v1868_v23 = vshll.u32 %v2745_v63, 16 }
  0x56   : > { %v1806_v62 = vrot.slane %v1804_v49, 5  ;;  %v1821_v21 = vsel %vm3492_vm5, %v1816_v4, %v1820_v3  ;;  %v3325_v49 = vld [vmem:[%s4053_s1 + $0x208] sm:$0xff]   ;;  %v1854_v4 = vshll.u32 %v2743_v60, 16  ;;  %v2062_v43 = vrot.slane %v3720_v44, 5 }
  0x57   : > { %3006 = vmatpush3.bf16.msra.mxu1 %v3310_v1  ;;  %v3321_v1 = vld [vmem:[%s4053_s1 + $0x1f8] sm:$0xff]   ;;  %v3324_v3 = vld [vmem:[%s4053_s1 + $0xc8] sm:$0xff]  }
  0x58   : > { %3126 = vmatpush3.bf16.msra.mxu0 %v3311_v6  ;;  %3007 = vmatprep.subr.bf16.mxu1 %v3312_v30  ;;  %v756_v6 = vrot.slane %v3617_v18, 5  ;;  %v1807_v20 = vsel %vm3492_vm5, %v1802_v0, %v1806_v62  ;;  %v3813_v62 = vld [vmem:[%s3444_s24 + $0x44] sm:$0x1]  ;;  %v3817_v0 = vld [vmem:[%s3444_s24 + $0x4c] sm:$0x1] }
  0x59   : > { %3127 = vmatprep.subr.bf16.mxu0 %v3313_v40  ;;  %v2764_v46 = vcombine.low %v1807_v20, %v1821_v21  ;;  %v1860_v20 = vshll.u32 %v3813_v62, 16  ;;  %v1865_v21 = vshrl.u32 %v2745_v63, 16  ;;  %v1874_v27 = vshll.u32 %v3817_v0, 16 }
  0x5a   : > { %v3871_v63 = vrot.slane %v1113_v47, 5 }
  0x5b   : > { %3008 = vmatpush3.bf16.msra.mxu1 %v3312_v30  ;;  %v1840_v30 = vshll.u32 %v2741_v22, 16  ;;  %v1853_v22 = vrot.slane %v1851_v54, 4  ;;  %v3330_v54 = vld [vmem:[%s4053_s1 + $0xe0] sm:$0xff]  }
  0x5c   : > { %3128 = vmatpush3.bf16.msra.mxu0 %v3313_v40  ;;  %3009 = vmatprep.subr.bf16.mxu1 %v3315_v61  ;;  %v1825_v40 = vrot.slane %v1823_v12, 4  ;;  %v1856_v12 = vrot.slane %v1854_v4, 5  ;;  %v1183_v4 = vshll.u32 %v3594_v58, 16  ;;  %v2074_v58 = vrot.slane %v3785_v8, 5 }
  0x5d   : > { %3129 = vmatprep.subr.bf16.mxu0 %v3317_v57  ;;  %v1842_v56 = vrot.slane %v1840_v30, 5  ;;  %v710_v30 = vld [vmem:[%s3444_s24 + $0x38] sm:$0xe]  ;;  %v2078_v8 = vrot.slane %v3797_v11, 5 }
  0x5e   : > { %v1829_v35 = vor.u32 %v1828_v41, %v1825_v40  ;;  %v1857_v37 = vor.u32 %v1856_v12, %v1853_v22  ;;  %v2541_v40 = vrot.slane %v709_v26, 9  ;;  %v3329_v41 = vld [vmem:[%s4053_s1 + $0x218] sm:$0xff]   ;;  %v2781_v22 = vld [vmem:[%s3444_s24 + $0x40] sm:$0xe]  ;;  %v2782_v12 = vld [vmem:[%s3444_s24 + $0x48] sm:$0xe] }
  0x5f   : > { %3010 = vmatpush3.bf16.msra.mxu1 %v3315_v61  ;;  %v1843_v61 = vor.u32 %v1842_v56, %v1839_v52  ;;  %v1876_v52 = vrot.slane %v1874_v27, 5  ;;  %v2790_v11 = vrot.slane %v2782_v12, 9 }
  0x60   : > { %3130 = vmatpush3.bf16.msra.mxu0 %v3317_v57  ;;  %3011 = vmatprep.subr.bf16.mxu1 %v3320_v5  ;;  %v2540_v57 = vrot.slane %v708_v15, 9  ;;  %v2542_v15 = vrot.slane %v710_v30, 9  ;;  %v757_v56 = vsel %vm3484_vm4, %v2541_v40, %v756_v6  ;;  %v3336_v30 = vld [vmem:[%s4053_s1 + $0xf8] sm:$0xff]  }
  0x61   : > { %3131 = vmatprep.subr.bf16.mxu0 %v3321_v1 }
  0x62   : > { %v753_v38 = vsel %vm3484_vm4, %v2540_v57, %v752_v34  ;;  %v761_v44 = vsel %vm3484_vm4, %v2542_v15, %v760_v16  ;;  %v3328_v57 = vld [vmem:[%s4053_s1 + $0xd8] sm:$0xff]  }
  0x63   : > { %3012 = vmatpush3.bf16.msra.mxu1 %v3320_v5  ;;  %v1844_v5 = vrot.slane %v1843_v61, 4  ;;  %v2561_v2 = vcombine.low %v749_v14, %v753_v38  ;;  %v2562_v60 = vcombine.low %v757_v56, %v761_v44  ;;  %v3338_v61 = vld [vmem:[%s3444_s24 + $0x8] ss:$8 sps:$4 sm:$0xff]   ;;  %v1155_v38 = vshll.u32 %v3542_v9, 16 }
  0x64   : > { %3132 = vmatpush3.bf16.msra.mxu0 %v3321_v1  ;;  %3021 = vmatprep.subr.bf16.mxu1 %v3322_v17  ;;  %v1830_v1 = vrot.slane %v1829_v35, 4  ;;  %v2775_v35 = vld [vmem:[%s3444_s24 + $0x10] sm:$0xe]  ;;  %v3333_v9 = vld [vmem:[%s4053_s1 + $0x228] sm:$0xff]  }
  0x65   : > { %3141 = vmatprep.subr.bf16.mxu0 %v3323_v7  ;;  %v1849_v51 = vsel %vm3492_vm5, %v1844_v5, %v1848_v10  ;;  %v2776_v10 = vld [vmem:[%s3444_s24 + $0x18] sm:$0xe]  ;;  %v2778_v5 = vld [vmem:[%s3444_s24 + $0x28] sm:$0xe]  ;;  %v2609_v44 = vld [vmem:[%s3444_s24 + $0x10] sm:$0xf] }
  0x66   : > { %3014 = vmatmul.mubr.bf16.vlgmr.msra.gmra.mrb[0].mxu1 %v2560_v42  ;;  %v1835_v34 = vsel %vm3492_vm5, %v1830_v1, %v1834_v50  ;;  %v1862_v42 = vrot.slane %v1860_v20, 5  ;;  %v2784_v14 = vrot.slane %v2776_v10, 9  ;;  %v2070_v20 = vrot.slane %v3747_v32, 5  ;;  %v2607_v10 = vld [vmem:[%s3444_s24 + $0x8] sm:$0xf] }
  0x67   : > { %3134 = vmatmul.mubr.bf16.vlgmr.msra.gmra.mrb[0].mxu0 %v2764_v46  ;;  %3022 = vmatpush3.bf16.msra.mxu1 %v3322_v17  ;;  %v2765_v31 = vcombine.low %v1835_v34, %v1849_v51  ;;  %v1870_v17 = vrot.slane %v1868_v23, 5  ;;  %v1858_v46 = vrot.slane %v1857_v37, 4  ;;  %v2780_v34 = vld [vmem:[%s3444_s24 + $0x38] sm:$0xe]  ;;  %v2786_v32 = vrot.slane %v2778_v5, 9 }
  0x68   : > { %3142 = vmatpush3.bf16.msra.mxu0 %v3323_v7  ;;  %v1867_v7 = vrot.slane %v1865_v21, 4  ;;  %3023 = vmatprep.subr.bf16.mxu1 %v3324_v3  ;;  %v2063_v16 = vsel %vm3484_vm4, %v2784_v14, %v2062_v43  ;;  %v2779_v21 = vld [vmem:[%s3444_s24 + $0x30] sm:$0xe]  ;;  %v3337_v23 = vld [vmem:[%s4053_s1 + $0x238] sm:$0xff]   ;;  %v2082_v51 = vrot.slane %v3813_v62, 5  ;;  %v1107_v14 = vshll.u32 %v2607_v10, 16 }
  0x69   : > { %3143 = vmatprep.subr.bf16.mxu0 %v3325_v49  ;;  %3017 = vmatprep.mubr.bf16.mxu1 %v2561_v2  ;;  %v1863_v18 = vsel %vm3492_vm5, %v1858_v46, %v1862_v42  ;;  %v2066_v2 = vrot.slane %v3734_v24, 5  ;;  %v3334_v24 = vld [vmem:[%s4053_s1 + $0xf0] sm:$0xff]   ;;  %v2787_v26 = vrot.slane %v2779_v21, 9  ;;  %v2086_v42 = vrot.slane %v3817_v0, 5 }
  0x6a   : > { %3137 = vmatprep.mubr.bf16.mxu0 %v2765_v31  ;;  %v1871_v50 = vor.u32 %v1870_v17, %v1867_v7  ;;  %v2789_v7 = vrot.slane %v2781_v22, 9  ;;  %v3927_v31 = vrot.slane %v1155_v38, 5  ;;  %v2071_v62 = vsel %vm3484_vm4, %v2786_v32, %v2070_v20  ;;  %v3339_v17 = vld [vmem:[%s4053_s1 + $0x100] sm:$0xff]   ;;  %v2617_v38 = vld [vmem:[%s3444_s24 + $0x30] sm:$0xf] }
  0x6b   : > { %3024 = vmatpush3.bf16.msra.mxu1 %v3324_v3  ;;  %v2067_v37 = vsel %vm3484_vm4, %v2785_v55, %v2066_v2  ;;  %v3933_v0 = vrot.slane %v1169_v48, 5  ;;  %v2075_v40 = vsel %vm3484_vm4, %v2787_v26, %v2074_v58  ;;  %v3950_v46 = vsel %vm3484_vm4, %v2790_v11, %v2086_v42  ;;  %v3350_v5 = vld [vmem:[%s3444_s24 + $0x28] ss:$8 sps:$4 sm:$0xff]   ;;  %v2619_v32 = vld [vmem:[%s3444_s24 + $0x38] sm:$0xf] }
  0x6c   : > { %3144 = vmatpush3.bf16.msra.mxu0 %v3325_v49  ;;  %v2783_v49 = vrot.slane %v2775_v35, 9  ;;  %3025 = vmatprep.subr.bf16.mxu1 %v3326_v39  ;;  %v1872_v6 = vrot.slane %v1871_v50, 4  ;;  %v3946_v43 = vsel %vm3484_vm4, %v2789_v7, %v2082_v51  ;;  %v3343_v50 = vld [vmem:[%s4056_s4] sm:$0xff]   ;;  %v2808_v56 = vcombine.low %v2067_v37, %v2071_v62  ;;  %v3342_v26 = vld [vmem:[%s4053_s1 + $0x110] sm:$0xff]  }
  0x6d   : > { %3145 = vmatprep.subr.bf16.mxu0 %v3327_v13  ;;  %v3340_v35 = vld [vmem:[%s3444_s24 + $0x18] ss:$8 sps:$4 sm:$0xff]   ;;  %v1177_v7 = vshll.u32 %v2617_v38, 16 }
  0x6e   : > { %v2059_v19 = vsel %vm3484_vm4, %v2783_v49, %v2058_v45  ;;  %v1877_v3 = vsel %vm3492_vm5, %v1872_v6, %v1876_v52  ;;  %3018 = vmatmul.mubr.bf16.gmra.mrb[4].mxu1 %v2562_v60  ;;  %v1141_v45 = vshll.u32 %v3529_v59, 16  ;;  %v3332_v59 = vld [vmem:[%s4053_s1 + $0xe8] sm:$0xff]   ;;  %v1197_v52 = vshll.u32 %v3628_v25, 16  ;;  %v2621_v11 = vld [vmem:[%s3444_s24 + $0x40] sm:$0xf] }
  0x6f   : > { %v2807_v1 = vcombine.low %v2059_v19, %v2063_v16  ;;  %3026 = vmatpush3.bf16.msra.mxu1 %v3326_v39  ;;  %v2766_v47 = vcombine.low %v1863_v18, %v1877_v3  ;;  %3037 = vmatprep.mubr.bf16.mxu1 %v3338_v61  ;;  %v3335_v39 = vld [vmem:[%s4053_s1 + $0x230] sm:$0xff]   ;;  %v1104_v49 = vshrl.u32 %v2607_v10, 16  ;;  %v1121_v18 = vshll.u32 %v2609_v44, 16  ;;  %v2613_v61 = vld [vmem:[%s3444_s24 + $0x20] sm:$0xf] }
  0x70   : > { %3146 = vmatpush3.bf16.msra.mxu0 %v3327_v13  ;;  %3027 = vmatprep.subr.bf16.mxu1 %v3328_v57  ;;  %v2788_v13 = vrot.slane %v2780_v34, 9  ;;  %v3922_v27 = vrot.slane %v1141_v45, 5  ;;  %v2810_v60 = vcombine.low %v3946_v43, %v3950_v46  ;;  %v1132_v19 = vshrl.u32 %v2611_v33, 16  ;;  %v2615_v3 = vld [vmem:[%s3444_s24 + $0x28] sm:$0xf]  ;;  %v3347_v46 = vld [vmem:[%s4053_s1 + $0x120] sm:$0xff]  }
  0x71   : > { %3147 = vmatprep.subr.bf16.mxu0 %v3329_v41  ;;  %3138 = vmatmul.mubr.bf16.gmra.mrb[4].mxu0 %v2766_v47  ;;  %v1135_v16 = vshll.u32 %v2611_v33, 16  ;;  %v1123_v45 = vrot.slane %v1121_v18, 5  ;;  %v1160_v55 = vshrl.u32 %v2615_v3, 16  ;;  %v1163_v58 = vshll.u32 %v2615_v3, 16 }
  0x72   : > { %3157 = vmatprep.mubr.bf16.mxu0 %v2807_v1  ;;  %v2079_v15 = vsel %vm3484_vm4, %v2788_v13, %v2078_v8  ;;  %v1106_v1 = vrot.slane %v1104_v49, 4  ;;  %v1134_v48 = vrot.slane %v1132_v19, 4  ;;  %v1179_v10 = vrot.slane %v1177_v7, 5 }
  0x73   : > { %3028 = vmatpush3.bf16.msra.mxu1 %v3328_v57  ;;  %v1118_v57 = vshrl.u32 %v2609_v44, 16  ;;  %v2809_v6 = vcombine.low %v2075_v40, %v2079_v15  ;;  %v1162_v12 = vrot.slane %v1160_v55, 4  ;;  %v3346_v40 = vld [vmem:[%s3909_s25] sm:$0xff]   ;;  %v1191_v49 = vshll.u32 %v2619_v32, 16 }
  0x74   : > { %3148 = vmatpush3.bf16.msra.mxu0 %v3329_v41  ;;  %3029 = vmatprep.subr.bf16.mxu1 %v3330_v54  ;;  %v3940_v41 = vrot.slane %v1183_v4, 5  ;;  %v1137_v4 = vrot.slane %v1135_v16, 5  ;;  %v3352_v15 = vld [vmem:[%s3444_s24 + $0x38] ss:$8 sps:$4 sm:$0xff]   ;;  %v1205_v33 = vshll.u32 %v2621_v11, 16  ;;  %v1199_v43 = vrot.slane %v1197_v52, 5 }
  0x75   : > { %3149 = vmatprep.subr.bf16.mxu0 %v3331_v28  ;;  %v1120_v47 = vrot.slane %v1118_v57, 4  ;;  %v1193_v19 = vrot.slane %v1191_v49, 5  ;;  %v3349_v52 = vld [vmem:[%s4053_s1 + $0x128] sm:$0xff]  }
  0x76   : > { %v1138_v21 = vor.u32 %v1137_v4, %v1134_v48 }
  0x77   : > { %3030 = vmatpush3.bf16.msra.mxu1 %v3330_v54  ;;  %v3341_v54 = vld [vmem:[%s4053_s1 + $0x108] sm:$0xff]   ;;  %v1124_v20 = vor.u32 %v1123_v45, %v1120_v47 }
  0x78   : > { %3150 = vmatpush3.bf16.msra.mxu0 %v3331_v28  ;;  %3031 = vmatprep.subr.bf16.mxu1 %v3332_v59  ;;  %v1109_v28 = vrot.slane %v1107_v14, 5  ;;  %v1139_v13 = vrot.slane %v1138_v21, 4  ;;  %v1202_v14 = vshrl.u32 %v2621_v11, 16 }
  0x79   : > { %3151 = vmatprep.subr.bf16.mxu0 %v3333_v9  ;;  %v1125_v22 = vrot.slane %v1124_v20, 4 }
  0x7a   : > { %v1110_v2 = vor.u32 %v1109_v28, %v1106_v1  ;;  %v1204_v16 = vrot.slane %v1202_v14, 4  ;;  %v1207_v1 = vrot.slane %v1205_v33, 5 }
  0x7b   : > { %3032 = vmatpush3.bf16.msra.mxu1 %v3332_v59  ;;  %v1146_v59 = vshrl.u32 %v2613_v61, 16  ;;  %v1130_v37 = vsel %vm3492_vm5, %v1125_v22, %v3877_v53  ;;  %v3344_v53 = vld [vmem:[%s4053_s1 + $0x118] sm:$0xff]  }
  0x7c   : > { %3152 = vmatpush3.bf16.msra.mxu0 %v3333_v9  ;;  %3033 = vmatprep.subr.bf16.mxu1 %v3334_v24  ;;  %v1149_v9 = vshll.u32 %v2613_v61, 16  ;;  %v1111_v8 = vrot.slane %v1110_v2, 4  ;;  %v1208_v47 = vor.u32 %v1207_v1, %v1204_v16 }
  0x7d   : > { %3153 = vmatprep.subr.bf16.mxu0 %v3335_v39 }
  0x7e   : > { %v1151_v34 = vrot.slane %v1149_v9, 5  ;;  %v1209_v48 = vrot.slane %v1208_v47, 4  ;;  %v3354_v9 = vld [vmem:[%s3909_s25 + $0x18] sm:$0xff]  }
  0x7f   : > { %3034 = vmatpush3.bf16.msra.mxu1 %v3334_v24  ;;  %v1174_v24 = vshrl.u32 %v2617_v38, 16 }
  0x80   : > { %3154 = vmatpush3.bf16.msra.mxu0 %v3335_v39  ;;  %3035 = vmatprep.subr.bf16.mxu1 %v3336_v30  ;;  %v1148_v39 = vrot.slane %v1146_v59, 4  ;;  %v3353_v59 = vld [vmem:[%s4053_s1 + $0x130] sm:$0xff]  }
  0x81   : > { %3155 = vmatprep.subr.bf16.mxu0 %v3337_v23  ;;  %v1176_v42 = vrot.slane %v1174_v24, 4  ;;  %v2819_v24 = vld [vmem:[%s4054_s2] ss:$0 sm:$0xff] }
  0x82   : > { %v1152_v51 = vor.u32 %v1151_v34, %v1148_v39 }
  0x83   : > { %3036 = vmatpush3.bf16.msra.mxu1 %v3336_v30  ;;  %v1116_v30 = vsel %vm3492_vm5, %v1111_v8, %v3871_v63  ;;  %v1180_v18 = vor.u32 %v1179_v10, %v1176_v42 }
  0x84   : > { %3156 = vmatpush3.bf16.msra.mxu0 %v3337_v23  ;;  %3045 = vmatprep.subr.bf16.mxu1 %v3339_v17  ;;  %v1165_v23 = vrot.slane %v1163_v58, 5 }
  0x85   : > { %3165 = vmatprep.subr.bf16.mxu0 %v3343_v50  ;;  %v1181_v3 = vrot.slane %v1180_v18, 4 }
  0x86   : > { %3038 = vmatmul.mubr.bf16.vlgmr.msra.gmra.mrb[0].mxu1 %v3340_v35  ;;  %v1166_v62 = vor.u32 %v1165_v23, %v1162_v12  ;;  %v1153_v35 = vrot.slane %v1152_v51, 4  ;;  %v2830_v12 = vld [vmem:[%s4057_s5] ss:$0 sm:$0xff] }
  0x87   : > { %3158 = vmatmul.mubr.bf16.vlgmr.msra.gmra.mrb[0].mxu0 %v2808_v56  ;;  %3046 = vmatpush3.bf16.msra.mxu1 %v3339_v17  ;;  %v1188_v17 = vshrl.u32 %v2619_v32, 16  ;;  %v1144_v56 = vsel %vm3492_vm5, %v1139_v13, %v3922_v27  ;;  %v3356_v27 = vld [vmem:[%s3444_s24 + $0x44] sm:$0x1] }
  0x88   : > { %3161 = vmatprep.mubr.bf16.mxu0 %v2809_v6  ;;  %3166 = vmatpush3.bf16.msra.mxu0 %v3343_v50  ;;  %v2639_v50 = vcombine.low %v1116_v30, %v1130_v37  ;;  %v1167_v44 = vrot.slane %v1166_v62, 4  ;;  %v1158_v57 = vsel %vm3492_vm5, %v1153_v35, %v3927_v31  ;;  %v1211_v6 = vshll.u32 %v3356_v27, 16 }
  0x89   : > { %3047 = vmatprep.subr.bf16.mxu1 %v3341_v54  ;;  %3167 = vmatprep.subr.bf16.mxu0 %v3345_v29  ;;  %v1190_v63 = vrot.slane %v1188_v17, 4  ;;  %v2640_v61 = vcombine.low %v1144_v56, %v1158_v57 }
  0x8a   : > { %3041 = vmatprep.mubr.bf16.mxu1 %v3350_v5  ;;  %v1172_v31 = vsel %vm3492_vm5, %v1167_v44, %v3933_v0  ;;  %v1213_v45 = vrot.slane %v1211_v6, 5  ;;  %v3348_v0 = vld [vmem:[%s3909_s25 + $0x8] sm:$0xff]   ;;  %v3355_v5 = vld [vmem:[%s4053_s1 + $0x138] sm:$0xff]  }
  0x8b   : > { %3048 = vmatpush3.bf16.msra.mxu1 %v3341_v54  ;;  %v1194_v28 = vor.u32 %v1193_v19, %v1190_v63 }
  0x8c   : > { %3168 = vmatpush3.bf16.msra.mxu0 %v3345_v29  ;;  %3049 = vmatprep.subr.bf16.mxu1 %v3342_v26  ;;  %v3351_v29 = vld [vmem:[%s3909_s25 + $0x10] sm:$0xff]  }
  0x8d   : > { %v1195_v54 = vrot.slane %v1194_v28, 4 }
  0x8e   : > { %3042 = vmatmul.mubr.bf16.gmra.mrb[4].mxu1 %v3352_v15 }
  0x8f   : > { %3162 = vmatmul.mubr.bf16.gmra.mrb[4].mxu0 %v2810_v60  ;;  %3050 = vmatpush3.bf16.msra.mxu1 %v3342_v26  ;;  %v1186_v60 = vsel %vm3492_vm5, %v1181_v3, %v3940_v41  ;;  %v1200_v25 = vsel %vm3492_vm5, %v1195_v54, %v1199_v43  ;;  %v1214_v41 = vsel %vm3492_vm5, %v1209_v48, %v1213_v45 }
  0x90   : > { %3169 = vmatprep.mubr.msk.bf16.mxu0 %vm2301_vm6, %v3346_v40  ;;  %3061 = vmatprep.mubr.bf16.mxu1 %v2639_v50  ;;  %v2641_v38 = vcombine.low %v1172_v31, %v1186_v60  ;;  %v2642_v4 = vcombine.low %v1200_v25, %v1214_v41 }
  0x91   : > { %3051 = vmatprep.subr.bf16.mxu1 %v3344_v53 }
  0x93   : > { %3052 = vmatpush3.bf16.msra.mxu1 %v3344_v53 }
  0x94   : > { %3053 = vmatprep.subr.bf16.mxu1 %v3347_v46 }
  0x97   : > { %3170 = vmatmul.mubr.msk.bf16.vlgmr.msra.gmra.mrb[0].mxu0 %vm2301_vm6, %v3348_v0  ;;  %3054 = vmatpush3.bf16.msra.mxu1 %v3347_v46 }
  0x98   : > { %3173 = vmatprep.mubr.msk.bf16.mxu0 %vm2301_vm6, %v3351_v29  ;;  %3055 = vmatprep.subr.bf16.mxu1 %v3349_v52 }
  0x9b   : > { %3056 = vmatpush3.bf16.msra.mxu1 %v3349_v52 }
  0x9c   : > { %3057 = vmatprep.subr.bf16.mxu1 %v3353_v59 }
  0x9f   : > { %3174 = vmatmul.mubr.msk.bf16.gmra.mrb[4].mxu0 %vm2301_vm6, %v3354_v9  ;;  %3058 = vmatpush3.bf16.msra.mxu1 %v3353_v59 }
  0xa0   : > { %3059 = vmatprep.subr.bf16.mxu1 %v3355_v5 }
  0xa3   : > { %3060 = vmatpush3.bf16.msra.mxu1 %v3355_v5 }
  0xa6   : > { %3062 = vmatmul.mubr.bf16.vlgmr.msra.gmra.mrb[0].mxu1 %v2640_v61 }
  0xa7   : > { %3065 = vmatprep.mubr.bf16.mxu1 %v2641_v38 }
  0xae   : > { %3066 = vmatmul.mubr.bf16.gmra.mrb[4].mxu1 %v2642_v4 }
 0x16a   : > { %v3171_v36 = vpop.f32.mrb[0].mxu0 }
 0x16b   : > { %v2348_v2 = vpop.f32.mrb[1].mxu0 }
 0x16c   : > { %v3172_v20 = vpop.f32.mrb[2].mxu0 }
 0x16d   : > { %v2351_v55 = vpop.f32.mrb[3].mxu0 }
 0x172   : > { %v3175_v58 = vpop.f32.mrb[4].mxu0 }
 0x173   : > { %v2364_v21 = vpop.f32.mrb[5].mxu0 }
 0x174   : > { %v3176_v39 = vpop.f32.mrb[6].mxu0 }
 0x175   : > { %v2367_v34 = vpop.f32.mrb[7].mxu0 }
 0x179   : > { %v3063_v32 = vpop.f32.mrb[0].mxu1 }
 0x17a   : > { %v3177_v8 = vadd.f32 %v3063_v32, %v2819_v24  ;;  %v1330_v22 = vpop.f32.mrb[1].mxu1 }
 0x17b   : > { %v3179_v23 = vadd.f32 %v2819_v24, %v1330_v22  ;;  %v3064_v26 = vpop.f32.mrb[2].mxu1 }
 0x17c   : > { %v3178_v13 = vadd.f32 %v3177_v8, %v3171_v36  ;;  %v3181_v51 = vadd.f32 %v3064_v26, %v2819_v24  ;;  %v1333_v42 = vpop.f32.mrb[3].mxu1 }
 0x17d   : > { %v3180_v7 = vadd.f32 %v3179_v23, %v2348_v2  ;;  %v3183_v11 = vadd.f32 %v2819_v24, %v1333_v42 }
 0x17e   : > { %v2396_v30 = vadd.f32 %v3178_v13, %v2830_v12  ;;  %v3182_v37 = vadd.f32 %v3181_v51, %v3172_v20 }
 0x17f   : > { %v2394_v62 = vadd.f32 %v3180_v7, %v2830_v12  ;;  %v3184_v17 = vadd.f32 %v3183_v11, %v2351_v55 }
 0x180   : > { %v2404_v40 = vmax.f32 %v2396_v30, 0.0  ;;  %v2397_v15 = vadd.f32 %v3182_v37, %v2830_v12 }
 0x181   : > { %v2402_v50 = vmax.f32 %v2394_v62, 0.0  ;;  %v2395_v56 = vadd.f32 %v3184_v17, %v2830_v12  ;;  %v3067_v35 = vpop.f32.mrb[4].mxu1 }
 0x182   : > { %2412 = vst [vmem:[%s4039_s13 + $0x10] sm:$0xff] %v2404_v40  ;;  %v2405_v10 = vmax.f32 %v2397_v15, 0.0  ;;  %v3185_v44 = vadd.f32 %v3067_v35, %v2819_v24  ;;  %v1346_v63 = vpop.f32.mrb[5].mxu1 }
 0x183   : > { %2410 = vst [vmem:[%s4039_s13] sm:$0xff] %v2402_v50  ;;  %v2403_v49 = vmax.f32 %v2395_v56, 0.0  ;;  %v3187_v14 = vadd.f32 %v2819_v24, %v1346_v63  ;;  %v3068_v53 = vpop.f32.mrb[6].mxu1 }
 0x184   : > { %2413 = vst [vmem:[%s4039_s13 + $0x18] sm:$0xff] %v2405_v10  ;;  %v3186_v57 = vadd.f32 %v3185_v44, %v3175_v58  ;;  %v3189_v18 = vadd.f32 %v3068_v53, %v2819_v24  ;;  %v1349_v33 = vpop.f32.mrb[7].mxu1 }
 0x185   : > { %2411 = vst [vmem:[%s4039_s13 + $0x8] sm:$0xff] %v2403_v49  ;;  %v3188_v27 = vadd.f32 %v3187_v14, %v2364_v21  ;;  %v3191_v6 = vadd.f32 %v2819_v24, %v1349_v33 }
 0x186   : > { %v2400_v61 = vadd.f32 %v3186_v57, %v2830_v12  ;;  %v3190_v19 = vadd.f32 %v3189_v18, %v3176_v39 }
 0x187   : > { %v2398_v16 = vadd.f32 %v3188_v27, %v2830_v12  ;;  %v3192_v31 = vadd.f32 %v3191_v6, %v2367_v34 }
 0x188   : > { %v2408_v3 = vmax.f32 %v2400_v61, 0.0  ;;  %v2401_v1 = vadd.f32 %v3190_v19, %v2830_v12 }
 0x189   : > { %v2406_v28 = vmax.f32 %v2398_v16, 0.0  ;;  %v2399_v43 = vadd.f32 %v3192_v31, %v2830_v12 }
 0x18a   : > { %2416 = vst [vmem:[%s4039_s13 + $0x30] sm:$0xff] %v2408_v3  ;;  %v2409_v46 = vmax.f32 %v2401_v1, 0.0 }
 0x18b   : > { %2414 = vst [vmem:[%s4039_s13 + $0x20] sm:$0xff] %v2406_v28  ;;  %v2407_v60 = vmax.f32 %v2399_v43, 0.0 }
 0x18c   : > { %2417 = vst [vmem:[%s4039_s13 + $0x38] sm:$0xff] %v2409_v46 }
 0x18d   : > { %2415 = vst [vmem:[%s4039_s13 + $0x28] sm:$0xff] %v2407_v60 }
 0x18e PF: > { %s16_s21 = sadd.s32 1, %s3363_s21  }
 0x18f   : > { %p13_p4 = scmp.ge.s32.totalorder %s16_s21, 4  }
 0x191   :  { %15 = sbr.rel (!%p13_p4) target bundleno = 1 (0x1), region = 87 }

</bundles_post_ra>
